<compile_context>
chip_gen: v5e
topology: v5e:2x2
jax: 0.10.0
libtpu: 0.0.40
codegen_flags: <defaults>
</compile_context>

<pallas_src>
import functools

import jax
import jax.numpy as jnp
import numpy as np
from jax.experimental import pallas as pl
from jax.experimental.pallas import tpu as pltpu

EPS = 1e-3  # BatchNorm2d(eps=0.001)


def _round_up(x, m):
    return ((x + m - 1) // m) * m


# ----------------------------- fused kernel ----------------------------------


def _fused_inception_kernel(p_ref, w_ref, gb_ref, o_ref,
                            y_sc, s_acc, ss_acc, scale_sc, shift_sc,
                            *, nhw, tm):
    # grid = (2, Mb): phase axis outer ("arbitrary"), row-block axis inner.
    #   phase 0: conv block -> y_sc (VMEM), accumulate sum / sum_sq
    #   phase 1: finalize BN stats once, normalize + ReLU from y_sc -> o_ref
    # p_ref: (tm, Kp) im2col patch block    w_ref: (Kp, Cp) folded 5x5 weight
    # gb_ref:(2, Cp)  [gamma, beta]         o_ref: (tm, Cp) output block
    # y_sc:  (Mp, Cp) conv intermediate     s_acc/ss_acc/scale_sc/shift_sc: (1, Cp)
    ph = pl.program_id(0)
    i = pl.program_id(1)
    off = pl.multiple_of(i * tm, tm)

    @pl.when(ph == 0)
    def _conv_phase():
        @pl.when(i == 0)
        def _init():
            s_acc[...] = jnp.zeros_like(s_acc)
            ss_acc[...] = jnp.zeros_like(ss_acc)

        y = jnp.dot(p_ref[...], w_ref[...], preferred_element_type=jnp.float32)
        y_sc[pl.ds(off, tm), :] = y
        # No bias, so M-padding rows are exact zeros -> no masking needed.
        s_acc[...] += jnp.sum(y, axis=0, keepdims=True)
        ss_acc[...] += jnp.sum(y * y, axis=0, keepdims=True)

    @pl.when(ph == 1)
    def _bn_phase():
        @pl.when(i == 0)
        def _finalize():
            inv_n = 1.0 / float(nhw)
            mean = s_acc[...] * inv_n
            var = jnp.maximum(ss_acc[...] * inv_n - mean * mean, 0.0)  # biased BN var
            scale = jax.lax.rsqrt(var + EPS) * gb_ref[0:1, :]
            scale_sc[...] = scale
            shift_sc[...] = gb_ref[1:2, :] - mean * scale

        y = y_sc[pl.ds(off, tm), :]
        o_ref[...] = jnp.maximum(y * scale_sc[...] + shift_sc[...], 0.0)


# ----------------------- recompute fallback kernels ---------------------------


def _conv_stats_kernel(p_ref, w_ref, s_ref, ss_ref):
    # Pass 1 (large case): conv block, emit per-block [sum, sum_sq] only.
    y = jnp.dot(p_ref[...], w_ref[...], preferred_element_type=jnp.float32)
    s_ref[...] = jnp.sum(y, axis=0, keepdims=True)
    ss_ref[...] = jnp.sum(y * y, axis=0, keepdims=True)


def _finalize_kernel(s_ref, ss_ref, gb_ref, sh_ref, *, nhw):
    # Tiny grid=(1,) kernel: reduce partial stats -> (2, Cp) [scale, shift].
    inv_n = 1.0 / float(nhw)
    mean = jnp.sum(s_ref[...], axis=0, keepdims=True) * inv_n
    var = jnp.maximum(jnp.sum(ss_ref[...], axis=0, keepdims=True) * inv_n
                      - mean * mean, 0.0)
    scale = jax.lax.rsqrt(var + EPS) * gb_ref[0:1, :]
    sh_ref[0:1, :] = scale
    sh_ref[1:2, :] = gb_ref[1:2, :] - mean * scale


def _conv_bn_kernel(p_ref, w_ref, sh_ref, o_ref):
    # Pass 2 (large case): recompute conv (cheaper than re-reading y) + BN + ReLU.
    y = jnp.dot(p_ref[...], w_ref[...], preferred_element_type=jnp.float32)
    o_ref[...] = jnp.maximum(y * sh_ref[0:1, :] + sh_ref[1:2, :], 0.0)


# ----------------------------- wrapper ---------------------------------------


def inception_forward(x_nchw, params, *, tm=512,
                      fused_vmem_budget=12 * 1024 * 1024,
                      matmul_dtype=jnp.float32):
    """x_nchw: (N, Cin, H, W) float32. params: (w1,p1,w3,p3,w5,p5) as in make_params."""
    w1, p1, w3, p3, w5, p5 = params
    N, Cin, H, W = x_nchw.shape
    C1, C3, C5 = w1.shape[-1], w3.shape[-1], w5.shape[-1]
    Ctot = C1 + C3 + C5
    Cp = _round_up(Ctot, 128)          # lane-dense output channels
    K = 25 * Cin
    Kp = _round_up(K, 128)             # lane-dense contraction dim
    NHW = N * H * W
    tm = _round_up(max(8, min(tm, _round_up(NHW, 8))), 8)
    Mp = _round_up(NHW, tm)
    Mb = Mp // tm

    f32 = jnp.float32
    # --- fold the 1x1 / 3x3 / 5x5 branches into one 5x5 weight (channel concat) ---
    # (conv bias dropped: training-mode BN subtracts the mean, so it cancels exactly)
    wc = jnp.zeros((5, 5, Cin, Cp), f32)
    wc = wc.at[2, 2, :, 0:C1].set(w1[0, 0])
    wc = wc.at[1:4, 1:4, :, C1:C1 + C3].set(w3)
    wc = wc.at[:, :, :, C1 + C3:Ctot].set(w5)
    wc = jnp.pad(wc.reshape(K, Cp), ((0, Kp - K), (0, 0)))        # (Kp, Cp)

    def _padc(v):
        return jnp.pad(v, (0, Cp - Ctot))

    gb = jnp.stack([_padc(jnp.concatenate([p1[1], p3[1], p5[1]])),
                    _padc(jnp.concatenate([p1[2], p3[2], p5[2]]))], axis=0)   # (2, Cp)

    # --- im2col (layout plumbing only, no FLOPs): shared pad-2 frame ---
    # TODO(synk): for large Cin/H/W, build the patch tile in-kernel from a
    # halo'd NHWC band (memory_space=pl.ANY + manual DMA) instead of
    # materializing (Mp, Kp) in HBM; at these toy sizes it is a few hundred KB.
    x = jnp.transpose(x_nchw, (0, 2, 3, 1))                        # NHWC
    xp = jnp.pad(x, ((0, 0), (2, 2), (2, 2), (0, 0)))
    taps = [xp[:, kh:kh + H, kw:kw + W, :] for kh in range(5) for kw in range(5)]
    patches = jnp.concatenate(taps, axis=-1).reshape(NHW, K)       # (NHW, 25*Cin)
    patches = jnp.pad(patches, ((0, Mp - NHW), (0, Kp - K)))       # (Mp, Kp)

    if matmul_dtype != jnp.float32:
        # Optional bf16 matmul inputs (halves dominant HBM bytes); accumulation
        # and all BN math stay f32 via preferred_element_type.
        patches = patches.astype(matmul_dtype)
        wc = wc.astype(matmul_dtype)

    # Rough per-call VMEM estimate for the fused path (double-buffered tiles +
    # resident weight + full conv intermediate scratch), f32 bytes.
    fused_bytes = 4 * (2 * tm * Kp + 2 * tm * Cp + Kp * Cp + 6 * Cp + Mp * Cp)

    if fused_bytes <= fused_vmem_budget:
        # ---- small case: single fused call, conv intermediate stays in VMEM ----
        # Both grid axes "arbitrary": the global-stat scratch is shared across
        # row blocks, so the block axis cannot be megacore-sharded here.
        kern = functools.partial(_fused_inception_kernel, nhw=NHW, tm=tm)
        out_flat = pl.pallas_call(
            kern,
            out_shape=jax.ShapeDtypeStruct((Mp, Cp), f32),
            grid=(2, Mb),
            in_specs=[
                # phase 0: block i; phase 1: stay on the last block (resident, no re-DMA)
                pl.BlockSpec((tm, Kp), lambda p, i: ((1 - p) * i + p * (Mb - 1), 0)),
                pl.BlockSpec((Kp, Cp), lambda p, i: (0, 0)),
                pl.BlockSpec((2, Cp), lambda p, i: (0, 0)),
            ],
            # phase 0 never changes the output block index -> no garbage writebacks;
            # phase 1 streams each block out exactly once.
            out_specs=pl.BlockSpec((tm, Cp), lambda p, i: (p * i, 0)),
            scratch_shapes=[
                pltpu.VMEM((Mp, Cp), jnp.float32),   # conv intermediate
                pltpu.VMEM((1, Cp), jnp.float32),    # sum
                pltpu.VMEM((1, Cp), jnp.float32),    # sum of squares
                pltpu.VMEM((1, Cp), jnp.float32),    # BN scale
                pltpu.VMEM((1, Cp), jnp.float32),    # BN shift
            ],
            compiler_params=pltpu.CompilerParams(
                dimension_semantics=("arbitrary", "arbitrary")),
        )(patches, wc, gb)
    else:
        # ---- large case: conv intermediate never hits HBM; recompute conv in
        #      pass 2 (patch re-read ~ y read, but the y write is gone).
        #      Row-block axis is "parallel" (megacore on v7x; keep Mb even there).
        sums, sumsqs = pl.pallas_call(
            _conv_stats_kernel,
            out_shape=(jax.ShapeDtypeStruct((Mb, Cp), f32),
                       jax.ShapeDtypeStruct((Mb, Cp), f32)),
            grid=(Mb,),
            in_specs=[pl.BlockSpec((tm, Kp), lambda i: (i, 0)),
                      pl.BlockSpec((Kp, Cp), lambda i: (0, 0))],
            out_specs=(pl.BlockSpec((1, Cp), lambda i: (i, 0)),
                       pl.BlockSpec((1, Cp), lambda i: (i, 0))),
            compiler_params=pltpu.CompilerParams(
                dimension_semantics=("parallel",)),
        )(patches, wc)

        sh = pl.pallas_call(
            functools.partial(_finalize_kernel, nhw=NHW),
            out_shape=jax.ShapeDtypeStruct((2, Cp), f32),
            grid=(1,),
            in_specs=[pl.BlockSpec((Mb, Cp), lambda i: (0, 0)),
                      pl.BlockSpec((Mb, Cp), lambda i: (0, 0)),
                      pl.BlockSpec((2, Cp), lambda i: (0, 0))],
            out_specs=pl.BlockSpec((2, Cp), lambda i: (0, 0)),
        )(sums, sumsqs, gb)

        out_flat = pl.pallas_call(
            _conv_bn_kernel,
            out_shape=jax.ShapeDtypeStruct((Mp, Cp), f32),
            grid=(Mb,),
            in_specs=[pl.BlockSpec((tm, Kp), lambda i: (i, 0)),
                      pl.BlockSpec((Kp, Cp), lambda i: (0, 0)),
                      pl.BlockSpec((2, Cp), lambda i: (0, 0))],
            out_specs=pl.BlockSpec((tm, Cp), lambda i: (i, 0)),
            compiler_params=pltpu.CompilerParams(
                dimension_semantics=("parallel",)),
        )(patches, wc, sh)

    # Epilogue: slice off lane/row padding and restore NCHW (PyTorch layout).
    # If the consumer accepts NHWC, skip the transpose to save one relayout copy.
    out = out_flat[:NHW, :Ctot].reshape(N, H, W, Ctot)
    return jnp.transpose(out, (0, 3, 1, 2))                         # -> NCHW


# ----------------------------- reference & harness ---------------------------


def reference_forward(x_nchw, params):
    """Pure-JAX reference (lax conv + train-mode BN) for correctness checks."""
    w1, p1, w3, p3, w5, p5 = params
    x = jnp.transpose(x_nchw, (0, 2, 3, 1))

    def branch(w, p, pad):
        y = jax.lax.conv_general_dilated(
            x, w, window_strides=(1, 1),
            padding=[(pad, pad), (pad, pad)],
            dimension_numbers=("NHWC", "HWIO", "NHWC"))
        y = y + p[0]
        mean = jnp.mean(y, axis=(0, 1, 2), keepdims=True)
        var = jnp.mean((y - mean) ** 2, axis=(0, 1, 2), keepdims=True)
        y = (y - mean) * jax.lax.rsqrt(var + EPS) * p[1] + p[2]
        return jnp.maximum(y, 0.0)

    out = jnp.concatenate(
        [branch(w1, p1, 0), branch(w3, p3, 1), branch(w5, p5, 2)], axis=-1)
    return jnp.transpose(out, (0, 3, 1, 2))


def make_params(key, cin, c1, c3, c5):
    ks = jax.random.split(key, 12)

    def branch(kw, kb, kg, kbt, k, cout):
        w = jax.random.normal(kw, (k, k, cin, cout), jnp.float32) * 0.1
        conv_b = jax.random.normal(kb, (cout,), jnp.float32) * 0.05
        gamma = 1.0 + jax.random.normal(kg, (cout,), jnp.float32) * 0.1
        beta = jax.random.normal(kbt, (cout,), jnp.float32) * 0.05
        return w, jnp.stack([conv_b, gamma, beta], axis=0)   # (3, Cout)

    w1, p1 = branch(ks[0], ks[1], ks[2], ks[3], 1, c1)
    w3, p3 = branch(ks[4], ks[5], ks[6], ks[7], 3, c3)
    w5, p5 = branch(ks[8], ks[9], ks[10], ks[11], 5, c5)
    return (w1, p1, w3, p3, w5, p5)


if __name__ == "__main__":
    key = jax.random.PRNGKey(0)
    kx, kp = jax.random.split(key)

    # Inception(in_channels=4, num_1x1_filters=8, num_3x3_filters=8, num_5x5_filters=8)
    N, Cin, H, W = 2, 4, 16, 16
    C1, C3, C5 = 8, 8, 8

    x = jax.random.normal(kx, (N, Cin, H, W), jnp.float32)
    params = make_params(kp, Cin, C1, C3, C5)

    ref = jax.block_until_ready(reference_forward(x, params))

    # Fused single-call path (conv intermediate kept in VMEM).
    out = jax.block_until_ready(inception_forward(x, params))
    assert out.shape == (N, C1 + C3 + C5, H, W), out.shape
    np.testing.assert_allclose(np.asarray(out), np.asarray(ref),
                               rtol=1e-4, atol=1e-4)

    # Recompute fallback path (forced), used when y would not fit scoped VMEM.
    out2 = jax.block_until_ready(
        inception_forward(x, params, fused_vmem_budget=0))
    np.testing.assert_allclose(np.asarray(out2), np.asarray(ref),
                               rtol=1e-4, atol=1e-4)

    print("KERNEL_OK")
</pallas_src>

<mosaic_0001>
module attributes {stable_mosaic.version = 11 : i64} {
  func.func @_fused_inception_kernel(%arg0: i32, %arg1: i32, %arg2: memref<512x128xf32, #tpu.memory_space<vmem>>, %arg3: memref<128x128xf32, #tpu.memory_space<vmem>>, %arg4: memref<2x128xf32, #tpu.memory_space<vmem>>, %arg5: memref<512x128xf32, #tpu.memory_space<vmem>>, %arg6: memref<512x128xf32, #tpu.memory_space<vmem>>, %arg7: memref<1x128xf32, #tpu.memory_space<vmem>>, %arg8: memref<1x128xf32, #tpu.memory_space<vmem>>, %arg9: memref<1x128xf32, #tpu.memory_space<vmem>>, %arg10: memref<1x128xf32, #tpu.memory_space<vmem>>) attributes {dimension_semantics = [#tpu.dimension_semantics<arbitrary>, #tpu.dimension_semantics<arbitrary>], iteration_bounds = array<i64: 2, 1>, scalar_prefetch = 0 : i64, scratch_operands = 5 : i64, tpu.core_type = #tpu.core_type<tc>, window_params = [{transform_indices = @transform_0, window_bounds = array<i64: 512, 128>}, {pipeline_mode = #tpu.pipeline_mode<synchronous>, transform_indices = @transform_1, window_bounds = array<i64: 128, 128>}, {pipeline_mode = #tpu.pipeline_mode<synchronous>, transform_indices = @transform_2, window_bounds = array<i64: 2, 128>}, {transform_indices = @transform_3, window_bounds = array<i64: 512, 128>}]} {
    %c512_i32 = arith.constant 512 : i32
    %0 = arith.muli %arg1, %c512_i32 : i32
    %1 = tpu.assume_multiple %0, 512 : i32
    %c0_i32 = arith.constant 0 : i32
    %2 = arith.cmpi eq, %arg0, %c0_i32 : i32
    %3 = arith.extui %2 : i1 to i32
    %c0_i32_0 = arith.constant 0 : i32
    %4 = arith.cmpi ne, %3, %c0_i32_0 : i32
    scf.if %4 {
      %c0_i32_2 = arith.constant 0 : i32
      %8 = arith.cmpi eq, %arg1, %c0_i32_2 : i32
      %9 = arith.extui %8 : i1 to i32
      %c0_i32_3 = arith.constant 0 : i32
      %10 = arith.cmpi ne, %9, %c0_i32_3 : i32
      scf.if %10 {
        %cst_18 = arith.constant 0.000000e+00 : f32
        %27 = vector.broadcast %cst_18 : f32 to vector<1x128xf32>
        %c0_19 = arith.constant 0 : index
        %c0_20 = arith.constant 0 : index
        %28 = vector.load %arg7[%c0_19, %c0_20] : memref<1x128xf32, #tpu.memory_space<vmem>>, vector<1x128xf32>
        tpu.vector_store %arg7[%c0_19, %c0_20], %27 {strides = array<i32>} : memref<1x128xf32, #tpu.memory_space<vmem>>, vector<1x128xf32>,
        %cst_21 = arith.constant 0.000000e+00 : f32
        %29 = vector.broadcast %cst_21 : f32 to vector<1x128xf32>
        %c0_22 = arith.constant 0 : index
        %c0_23 = arith.constant 0 : index
        %30 = vector.load %arg8[%c0_22, %c0_23] : memref<1x128xf32, #tpu.memory_space<vmem>>, vector<1x128xf32>
        tpu.vector_store %arg8[%c0_22, %c0_23], %29 {strides = array<i32>} : memref<1x128xf32, #tpu.memory_space<vmem>>, vector<1x128xf32>,
      } else {
      }
      %c0 = arith.constant 0 : index
      %c0_4 = arith.constant 0 : index
      %11 = vector.load %arg2[%c0, %c0_4] : memref<512x128xf32, #tpu.memory_space<vmem>>, vector<512x128xf32>
      %c0_5 = arith.constant 0 : index
      %c0_6 = arith.constant 0 : index
      %12 = vector.load %arg3[%c0_5, %c0_6] : memref<128x128xf32, #tpu.memory_space<vmem>>, vector<128x128xf32>
      %cst = arith.constant dense<0.000000e+00> : vector<512x128xf32>
      %13 = tpu.matmul %11, %12, %cst {dimension_numbers = #tpu.dot_dimension_numbers<[1], [0], [0], [1], [0, 0, 1, 1], [], []>} : vector<512x128xf32>, vector<128x128xf32>, vector<512x128xf32> -> vector<512x128xf32>
      %14 = arith.index_cast %1 : i32 to index
      %c0_7 = arith.constant 0 : index
      %15 = vector.load %arg6[%14, %c0_7] : memref<512x128xf32, #tpu.memory_space<vmem>>, vector<512x128xf32>
      tpu.vector_store %arg6[%14, %c0_7], %13 {strides = array<i32>} : memref<512x128xf32, #tpu.memory_space<vmem>>, vector<512x128xf32>,
      %c0_8 = arith.constant 0 : index
      %c0_9 = arith.constant 0 : index
      %16 = vector.load %arg7[%c0_8, %c0_9] : memref<1x128xf32, #tpu.memory_space<vmem>>, vector<1x128xf32>
      %cst_10 = arith.constant dense<0.000000e+00> : vector<128xf32>
      %17 = vector.multi_reduction <add>, %13, %cst_10 [0] : vector<512x128xf32> to vector<128xf32>
      %18 = vector.shape_cast %17 : vector<128xf32> to vector<1x128xf32>
      %19 = arith.addf %16, %18 : vector<1x128xf32>
      %c0_11 = arith.constant 0 : index
      %c0_12 = arith.constant 0 : index
      %20 = vector.load %arg7[%c0_11, %c0_12] : memref<1x128xf32, #tpu.memory_space<vmem>>, vector<1x128xf32>
      tpu.vector_store %arg7[%c0_11, %c0_12], %19 {strides = array<i32>} : memref<1x128xf32, #tpu.memory_space<vmem>>, vector<1x128xf32>,
      %c0_13 = arith.constant 0 : index
      %c0_14 = arith.constant 0 : index
      %21 = vector.load %arg8[%c0_13, %c0_14] : memref<1x128xf32, #tpu.memory_space<vmem>>, vector<1x128xf32>
      %22 = arith.mulf %13, %13 : vector<512x128xf32>
      %cst_15 = arith.constant dense<0.000000e+00> : vector<128xf32>
      %23 = vector.multi_reduction <add>, %22, %cst_15 [0] : vector<512x128xf32> to vector<128xf32>
      %24 = vector.shape_cast %23 : vector<128xf32> to vector<1x128xf32>
      %25 = arith.addf %21, %24 : vector<1x128xf32>
      %c0_16 = arith.constant 0 : index
      %c0_17 = arith.constant 0 : index
      %26 = vector.load %arg8[%c0_16, %c0_17] : memref<1x128xf32, #tpu.memory_space<vmem>>, vector<1x128xf32>
      tpu.vector_store %arg8[%c0_16, %c0_17], %25 {strides = array<i32>} : memref<1x128xf32, #tpu.memory_space<vmem>>, vector<1x128xf32>,
    } else {
    }
    %c1_i32 = arith.constant 1 : i32
    %5 = arith.cmpi eq, %arg0, %c1_i32 : i32
    %6 = arith.extui %5 : i1 to i32
    %c0_i32_1 = arith.constant 0 : i32
    %7 = arith.cmpi ne, %6, %c0_i32_1 : i32
    scf.if %7 {
      %c0_i32_2 = arith.constant 0 : i32
      %8 = arith.cmpi eq, %arg1, %c0_i32_2 : i32
      %9 = arith.extui %8 : i1 to i32
      %c0_i32_3 = arith.constant 0 : i32
      %10 = arith.cmpi ne, %9, %c0_i32_3 : i32
      scf.if %10 {
        %c0_10 = arith.constant 0 : index
        %c0_11 = arith.constant 0 : index
        %22 = vector.load %arg7[%c0_10, %c0_11] : memref<1x128xf32, #tpu.memory_space<vmem>>, vector<1x128xf32>
        %cst_12 = arith.constant 0.001953125 : f32
        %23 = vector.broadcast %cst_12 : f32 to vector<1x128xf32>
        %24 = arith.mulf %22, %23 : vector<1x128xf32>
        %c0_13 = arith.constant 0 : index
        %c0_14 = arith.constant 0 : index
        %25 = vector.load %arg8[%c0_13, %c0_14] : memref<1x128xf32, #tpu.memory_space<vmem>>, vector<1x128xf32>
        %cst_15 = arith.constant 0.001953125 : f32
        %26 = vector.broadcast %cst_15 : f32 to vector<1x128xf32>
        %27 = arith.mulf %25, %26 : vector<1x128xf32>
        %28 = arith.mulf %24, %24 : vector<1x128xf32>
        %29 = arith.subf %27, %28 : vector<1x128xf32>
        %cst_16 = arith.constant 0.000000e+00 : f32
        %30 = vector.broadcast %cst_16 : f32 to vector<1x128xf32>
        %31 = arith.maximumf %29, %30 : vector<1x128xf32>
        %cst_17 = arith.constant 1.000000e-03 : f32
        %32 = vector.broadcast %cst_17 : f32 to vector<1x128xf32>
        %33 = arith.addf %31, %32 : vector<1x128xf32>
        %34 = math.rsqrt %33 : vector<1x128xf32>
        %c0_18 = arith.constant 0 : index
        %c0_19 = arith.constant 0 : index
        %35 = vector.load %arg4[%c0_18, %c0_19] : memref<2x128xf32, #tpu.memory_space<vmem>>, vector<1x128xf32>
        %36 = arith.mulf %34, %35 : vector<1x128xf32>
        %c0_20 = arith.constant 0 : index
        %c0_21 = arith.constant 0 : index
        %37 = vector.load %arg9[%c0_20, %c0_21] : memref<1x128xf32, #tpu.memory_space<vmem>>, vector<1x128xf32>
        tpu.vector_store %arg9[%c0_20, %c0_21], %36 {strides = array<i32>} : memref<1x128xf32, #tpu.memory_space<vmem>>, vector<1x128xf32>,
        %c1 = arith.constant 1 : index
        %c0_22 = arith.constant 0 : index
        %38 = vector.load %arg4[%c1, %c0_22] : memref<2x128xf32, #tpu.memory_space<vmem>>, vector<1x128xf32>
        %39 = arith.mulf %24, %36 : vector<1x128xf32>
        %40 = arith.subf %38, %39 : vector<1x128xf32>
        %c0_23 = arith.constant 0 : index
        %c0_24 = arith.constant 0 : index
        %41 = vector.load %arg10[%c0_23, %c0_24] : memref<1x128xf32, #tpu.memory_space<vmem>>, vector<1x128xf32>
        tpu.vector_store %arg10[%c0_23, %c0_24], %40 {strides = array<i32>} : memref<1x128xf32, #tpu.memory_space<vmem>>, vector<1x128xf32>,
      } else {
      }
      %11 = arith.index_cast %1 : i32 to index
      %c0 = arith.constant 0 : index
      %12 = vector.load %arg6[%11, %c0] : memref<512x128xf32, #tpu.memory_space<vmem>>, vector<512x128xf32>
      %c0_4 = arith.constant 0 : index
      %c0_5 = arith.constant 0 : index
      %13 = vector.load %arg9[%c0_4, %c0_5] : memref<1x128xf32, #tpu.memory_space<vmem>>, vector<1x128xf32>
      %14 = vector.broadcast %13 : vector<1x128xf32> to vector<512x128xf32>
      %15 = arith.mulf %12, %14 : vector<512x128xf32>
      %c0_6 = arith.constant 0 : index
      %c0_7 = arith.constant 0 : index
      %16 = vector.load %arg10[%c0_6, %c0_7] : memref<1x128xf32, #tpu.memory_space<vmem>>, vector<1x128xf32>
      %17 = vector.broadcast %16 : vector<1x128xf32> to vector<512x128xf32>
      %18 = arith.addf %15, %17 : vector<512x128xf32>
      %cst = arith.constant 0.000000e+00 : f32
      %19 = vector.broadcast %cst : f32 to vector<512x128xf32>
      %20 = arith.maximumf %18, %19 : vector<512x128xf32>
      %c0_8 = arith.constant 0 : index
      %c0_9 = arith.constant 0 : index
      %21 = vector.load %arg5[%c0_8, %c0_9] : memref<512x128xf32, #tpu.memory_space<vmem>>, vector<512x128xf32>
      tpu.vector_store %arg5[%c0_8, %c0_9], %20 {strides = array<i32>} : memref<512x128xf32, #tpu.memory_space<vmem>>, vector<512x128xf32>,
    } else {
    }
    return
  }
  func.func @transform_0(%arg0: i32, %arg1: i32) -> (i32, i32) {
    %c1_i32 = arith.constant 1 : i32
    %0 = arith.subi %c1_i32, %arg0 : i32
    %1 = arith.muli %0, %arg1 : i32
    %c0_i32 = arith.constant 0 : i32
    %2 = arith.muli %arg0, %c0_i32 : i32
    %3 = arith.addi %1, %2 : i32
    %c0_i32_0 = arith.constant 0 : i32
    %c0_i32_1 = arith.constant 0 : i32
    return %3, %c0_i32_0 : i32, i32
  }
  func.func @transform_1(%arg0: i32, %arg1: i32) -> (i32, i32) {
    %c0_i32 = arith.constant 0 : i32
    %c0_i32_0 = arith.constant 0 : i32
    %c0_i32_1 = arith.constant 0 : i32
    return %c0_i32, %c0_i32_0 : i32, i32
  }
  func.func @transform_2(%arg0: i32, %arg1: i32) -> (i32, i32) {
    %c0_i32 = arith.constant 0 : i32
    %c0_i32_0 = arith.constant 0 : i32
    %c0_i32_1 = arith.constant 0 : i32
    return %c0_i32, %c0_i32_0 : i32, i32
  }
  func.func @transform_3(%arg0: i32, %arg1: i32) -> (i32, i32) {
    %0 = arith.muli %arg0, %arg1 : i32
    %c0_i32 = arith.constant 0 : i32
    %c0_i32_0 = arith.constant 0 : i32
    return %0, %c0_i32 : i32, i32
  }
}

</mosaic_0001>

<bundles_post_ra>
// kernel: tpu_custom_call.1
= control target key start
LH: loop header
LB: loop body
LE: loop exit
PB: predicated region body
PF: predicated region fallthrough
CT: control target
= control target key end

     0   :  { %8 = vsyncpa [#allocation8], 0  ;;  %s2124_s0 = inlined_call_operand.hbm [shape: f32[512,128], index: 0, kind: input, shape index: {}]   ;;  %s2125_s1 = inlined_call_operand.hbm [shape: f32[128,128], index: 1, kind: input, shape index: {}]   ;;  %s2126_s2 = inlined_call_operand.hbm [shape: f32[2,128], index: 2, kind: input, shape index: {}]   ;;  %s2127_s3 = inlined_call_operand.hbm [shape: f32[512,128], index: 3, kind: output, shape index: {}]  }
   0x1   :  { %10 = vsyncpa [#allocation8 + $0x1], 0 }
   0x2   :  { %11 = vsyncpa [#allocation11], 0 }
   0x3   :  { %12 = vsyncpa [#allocation9], 0 }
   0x4   :  { %14 = vsyncpa [#allocation9 + $0x1], 0  ;;  %s1629_s12 = smov 0   ;;  %s1631_s13 = smov 0  }
   0x5   :  { %s1633_s14 = smov 0  }
   0x6 LB: > { %s1303_s15 = sadd.s32 4294967295, %s1598_s14   ;;  %s1304_s16 = sadd.s32 4294967294, %s1598_s14   ;;  %s1598_s14 = sphi %s1633_s14, %s20_s14   ;;  %s1594_s13 = sphi %s1631_s13, %s2131_s13   ;;  %s1590_s12 = sphi %s1629_s12, %s2130_s12  }
   0x7   : > { %s32_s17 = sadd.s32 1, %s1594_s13  ;;  %p1305_p0 = scmp.ge.s32.totalorder %s1598_s14, 1 }
   0x8   : > { %p34_p1 = scmp.ge.s32.totalorder %s32_s17, 2  ;;  %p137_p2 = scmp.lt.s32.totalorder %s1598_s14, 3 }
   0x9   : > { %p1651_p3 = scmp.eq.s32.totalorder %s1303_s15, 0  ;;  %s148_s22 = sshll.u32 %s2125_s1, 4  ;;  %s149_s22 = int_to_ptr.hbm [resolvable:$true] %s148_s22 }
   0xa   : > { %s2133_s17 = smov (%p34_p1, %s32_s17), 0  ;;  %p1657_p4 = pnand %p1305_p0, %p137_p2 }
   0xb   : > { %s1600_s23 = smov [#allocation10]   ;;  %p1308_p7 = scmp.ge.s32.totalorder %s1598_s14, 2 }
   0xc   : > { %p1384_p5 = pneg %p1657_p4  ;;  %s150_s24 = sshll.u32 %s1600_s23, 4  ;;  %s151_s24 = int_to_ptr.vmem [resolvable:$true] %s150_s24 }
   0xd   : > { %s163_s27 = sshll.u32 %s2126_s2, 4  ;;  %s1601_s28 = smov 128   ;;  %s164_s27 = int_to_ptr.hbm [resolvable:$true] %s163_s27 }
   0xe   : > { %p1385_p6 = pnand %p1651_p3, %p1384_p5  ;;  %s1602_s29 = smov 8  }
   0xf   : > { %s1603_s30 = smov [#allocation12]   ;;  %p1401_p8 = scmp.lt.s32.totalorder %s1598_s14, 2 }
  0x10   : > { %1387 = dma.hbm_to_vmem [thread:$0]  (!%p1385_p6), %s149_s22, 2048, %s151_s24, [#allocation11], %s1601_s28, %s1601_s28, %s1602_s29  }
  0x11   : > { %s165_s4 = sshll.u32 %s1603_s30, 4  ;;  %p1402_p9 = scmp.eq.s32.totalorder %s1598_s14, 0  ;;  %s166_s4 = int_to_ptr.vmem [resolvable:$true] %s165_s4 }
  0x12   : > { %1390 = dma.hbm_to_vmem [thread:$0]  (!%p1385_p6), %s164_s27, 32, %s166_s4, [#allocation11]  }
  0x13   : > { %s188_s7 = sshll.u32 %s2124_s0, 4  ;;  %s1604_s8 = smov [#allocation7]   ;;  %s189_s7 = int_to_ptr.hbm [resolvable:$true] %s188_s7 }
  0x14   : > { %s190_s9 = sshll.u32 %s1604_s8, 4  ;;  %p1392_p10 = pnand %p1402_p9, %p1401_p8  ;;  %s191_s9 = int_to_ptr.vmem [resolvable:$true] %s190_s9 }
  0x15   : > { %202 = sbr.rel (%p1657_p4) target bundleno = 551 (0x227), region = 32 }
  0x16   : > { %1394 = dma.hbm_to_vmem [thread:$0]  (!%p1392_p10), %s189_s7, 8192, %s191_s9, [#allocation8], %s1601_s28, %s1601_s28, %s1602_s29  }
  0x1a   : > { %1577 = dma.done.wait (%p1651_p3), [#allocation8], 8192  }
  0x1b   : > { %1579 = vsyncadd (%p1651_p3), [#allocation8], 4294959104 }
  0x1c   : > { %1581 = dma.done.wait (%p1651_p3), [#allocation11], 2080  }
  0x1d   : > { %1583 = vsyncadd (%p1651_p3), [#allocation11], 4294965216  ;;  %p1314_p11 = scmp.ne.s32.totalorder %s1590_s12, 0 }
  0x1f   : > { %251 = sbr.rel (%p1314_p11) target bundleno = 429 (0x1ad), region = 48 }
  0x24   : > { %v337_v0 = vld [vmem:[#allocation10 + $0x78] sm:$0xff]  ;;  %v336_v1 = vld [vmem:[#allocation10 + $0x70] sm:$0xff]  ;;  %v335_v2 = vld [vmem:[#allocation10 + $0x68] sm:$0xff] }
  0x25   : > { %338 = vmatpush.msra.mxu0 %v337_v0  ;;  %1320 = vmatpush.msra.mxu1 %v337_v0  ;;  %v334_v3 = vld [vmem:[#allocation10 + $0x60] sm:$0xff]  ;;  %v333_v4 = vld [vmem:[#allocation10 + $0x58] sm:$0xff]  ;;  %v332_v5 = vld [vmem:[#allocation10 + $0x50] sm:$0xff] }
  0x26   : > { %1321 = vmatpush.msra.mxu2 %v337_v0  ;;  %1322 = vmatpush.msra.mxu3 %v337_v0  ;;  %v331_v6 = vld [vmem:[#allocation10 + $0x48] sm:$0xff]  ;;  %v330_v7 = vld [vmem:[#allocation10 + $0x40] sm:$0xff]  ;;  %v329_v8 = vld [vmem:[#allocation10 + $0x38] sm:$0xff] }
  0x27   : > { %339 = vmatpush.msra.mxu0 %v336_v1  ;;  %1323 = vmatpush.msra.mxu1 %v336_v1  ;;  %v328_v9 = vld [vmem:[#allocation10 + $0x30] sm:$0xff]  ;;  %v327_v10 = vld [vmem:[#allocation10 + $0x28] sm:$0xff]  ;;  %v326_v11 = vld [vmem:[#allocation10 + $0x20] sm:$0xff] }
  0x28   : > { %1324 = vmatpush.msra.mxu2 %v336_v1  ;;  %1325 = vmatpush.msra.mxu3 %v336_v1  ;;  %v325_v12 = vld [vmem:[#allocation10 + $0x18] sm:$0xff]  ;;  %v324_v13 = vld [vmem:[#allocation10 + $0x10] sm:$0xff]  ;;  %v323_v14 = vld [vmem:[#allocation10 + $0x8] sm:$0xff] }
  0x29   : > { %340 = vmatpush.msra.mxu0 %v335_v2  ;;  %1326 = vmatpush.msra.mxu1 %v335_v2  ;;  %v322_v15 = vld [vmem:[#allocation10] sm:$0xff]  ;;  %v259_v18 = vld [vmem:[#allocation7 + $0x8] sm:$0xff]  ;;  %v260_v20 = vld [vmem:[#allocation7 + $0x10] sm:$0xff] }
  0x2a   : > { %1327 = vmatpush.msra.mxu2 %v335_v2  ;;  %1328 = vmatpush.msra.mxu3 %v335_v2  ;;  %v258_v16 = vld [vmem:[#allocation7] sm:$0xff]  ;;  %v275_v19 = vld [vmem:[#allocation7 + $0x88] sm:$0xff]  ;;  %v276_v21 = vld [vmem:[#allocation7 + $0x90] sm:$0xff] }
  0x2b   : > { %341 = vmatpush.msra.mxu0 %v334_v3  ;;  %1329 = vmatpush.msra.mxu1 %v334_v3  ;;  %v274_v17 = vld [vmem:[#allocation7 + $0x80] sm:$0xff]  ;;  %v261_v22 = vld [vmem:[#allocation7 + $0x18] sm:$0xff]  ;;  %v291_v27 = vld [vmem:[#allocation7 + $0x108] sm:$0xff] }
  0x2c   : > { %1330 = vmatpush.msra.mxu2 %v334_v3  ;;  %1331 = vmatpush.msra.mxu3 %v334_v3  ;;  %v277_v23 = vld [vmem:[#allocation7 + $0x98] sm:$0xff]  ;;  %v290_v24 = vld [vmem:[#allocation7 + $0x100] sm:$0xff]  ;;  %v263_v28 = vld [vmem:[#allocation7 + $0x28] sm:$0xff] }
  0x2d   : > { %342 = vmatpush.msra.mxu0 %v333_v4  ;;  %1332 = vmatpush.msra.mxu1 %v333_v4  ;;  %v262_v25 = vld [vmem:[#allocation7 + $0x20] sm:$0xff]  ;;  %v279_v29 = vld [vmem:[#allocation7 + $0xa8] sm:$0xff]  ;;  %v292_v30 = vld [vmem:[#allocation7 + $0x110] sm:$0xff] }
  0x2e   : > { %1333 = vmatpush.msra.mxu2 %v333_v4  ;;  %1334 = vmatpush.msra.mxu3 %v333_v4  ;;  %v278_v26 = vld [vmem:[#allocation7 + $0xa0] sm:$0xff]  ;;  %v264_v31 = vld [vmem:[#allocation7 + $0x30] sm:$0xff]  ;;  %v293_v33 = vld [vmem:[#allocation7 + $0x118] sm:$0xff] }
  0x2f   : > { %343 = vmatpush.msra.mxu0 %v332_v5  ;;  %1335 = vmatpush.msra.mxu1 %v332_v5  ;;  %v280_v32 = vld [vmem:[#allocation7 + $0xb0] sm:$0xff]  ;;  %v265_v34 = vld [vmem:[#allocation7 + $0x38] sm:$0xff]  ;;  %v294_v36 = vld [vmem:[#allocation7 + $0x120] sm:$0xff] }
  0x30   : > { %1336 = vmatpush.msra.mxu2 %v332_v5  ;;  %1337 = vmatpush.msra.mxu3 %v332_v5  ;;  %v281_v35 = vld [vmem:[#allocation7 + $0xb8] sm:$0xff]  ;;  %v306_v37 = vld [vmem:[#allocation7 + $0x180] sm:$0xff]  ;;  %v295_v40 = vld [vmem:[#allocation7 + $0x128] sm:$0xff] }
  0x31   : > { %344 = vmatpush.msra.mxu0 %v331_v6  ;;  %1338 = vmatpush.msra.mxu1 %v331_v6  ;;  %v266_v38 = vld [vmem:[#allocation7 + $0x40] sm:$0xff]  ;;  %v307_v41 = vld [vmem:[#allocation7 + $0x188] sm:$0xff]  ;;  %v296_v44 = vld [vmem:[#allocation7 + $0x130] sm:$0xff] }
  0x32   : > { %1339 = vmatpush.msra.mxu2 %v331_v6  ;;  %1340 = vmatpush.msra.mxu3 %v331_v6  ;;  %v282_v39 = vld [vmem:[#allocation7 + $0xc0] sm:$0xff]  ;;  %v267_v42 = vld [vmem:[#allocation7 + $0x48] sm:$0xff]  ;;  %v308_v45 = vld [vmem:[#allocation7 + $0x190] sm:$0xff] }
  0x33   : > { %345 = vmatpush.msra.mxu0 %v330_v7  ;;  %1341 = vmatpush.msra.mxu1 %v330_v7  ;;  %v283_v43 = vld [vmem:[#allocation7 + $0xc8] sm:$0xff]  ;;  %v268_v46 = vld [vmem:[#allocation7 + $0x50] sm:$0xff]  ;;  %v297_v48 = vld [vmem:[#allocation7 + $0x138] sm:$0xff] }
  0x34   : > { %1342 = vmatpush.msra.mxu2 %v330_v7  ;;  %1343 = vmatpush.msra.mxu3 %v330_v7  ;;  %v284_v47 = vld [vmem:[#allocation7 + $0xd0] sm:$0xff]  ;;  %v309_v49 = vld [vmem:[#allocation7 + $0x198] sm:$0xff]  ;;  %v298_v52 = vld [vmem:[#allocation7 + $0x140] sm:$0xff] }
  0x35   : > { %346 = vmatpush.msra.mxu0 %v329_v8  ;;  %1344 = vmatpush.msra.mxu1 %v329_v8  ;;  %v269_v50 = vld [vmem:[#allocation7 + $0x58] sm:$0xff]  ;;  %v310_v53 = vld [vmem:[#allocation7 + $0x1a0] sm:$0xff]  ;;  %v299_v56 = vld [vmem:[#allocation7 + $0x148] sm:$0xff] }
  0x36   : > { %1345 = vmatpush.msra.mxu2 %v329_v8  ;;  %1346 = vmatpush.msra.mxu3 %v329_v8  ;;  %v285_v51 = vld [vmem:[#allocation7 + $0xd8] sm:$0xff]  ;;  %v270_v54 = vld [vmem:[#allocation7 + $0x60] sm:$0xff]  ;;  %v311_v57 = vld [vmem:[#allocation7 + $0x1a8] sm:$0xff] }
  0x37   : > { %347 = vmatpush.msra.mxu0 %v328_v9  ;;  %1347 = vmatpush.msra.mxu1 %v328_v9  ;;  %v286_v55 = vld [vmem:[#allocation7 + $0xe0] sm:$0xff]  ;;  %v271_v58 = vld [vmem:[#allocation7 + $0x68] sm:$0xff]  ;;  %v300_v60 = vld [vmem:[#allocation7 + $0x150] sm:$0xff] }
  0x38   : > { %1348 = vmatpush.msra.mxu2 %v328_v9  ;;  %1349 = vmatpush.msra.mxu3 %v328_v9  ;;  %v287_v59 = vld [vmem:[#allocation7 + $0xe8] sm:$0xff]  ;;  %v312_v61 = vld [vmem:[#allocation7 + $0x1b0] sm:$0xff]  ;;  %v301_v0 = vld [vmem:[#allocation7 + $0x158] sm:$0xff] }
  0x39   : > { %348 = vmatpush.msra.mxu0 %v327_v10  ;;  %1350 = vmatpush.msra.mxu1 %v327_v10  ;;  %v272_v62 = vld [vmem:[#allocation7 + $0x70] sm:$0xff]  ;;  %v313_v1 = vld [vmem:[#allocation7 + $0x1b8] sm:$0xff]  ;;  %v302_v4 = vld [vmem:[#allocation7 + $0x160] sm:$0xff] }
  0x3a   : > { %1351 = vmatpush.msra.mxu2 %v327_v10  ;;  %1352 = vmatpush.msra.mxu3 %v327_v10  ;;  %v288_v63 = vld [vmem:[#allocation7 + $0xf0] sm:$0xff]  ;;  %v273_v2 = vld [vmem:[#allocation7 + $0x78] sm:$0xff]  ;;  %v314_v5 = vld [vmem:[#allocation7 + $0x1c0] sm:$0xff] }
  0x3b   : > { %349 = vmatpush.msra.mxu0 %v326_v11  ;;  %1353 = vmatpush.msra.mxu1 %v326_v11  ;;  %v289_v3 = vld [vmem:[#allocation7 + $0xf8] sm:$0xff]  ;;  %v303_v8 = vld [vmem:[#allocation7 + $0x168] sm:$0xff] }
  0x3c   : > { %1354 = vmatpush.msra.mxu2 %v326_v11  ;;  %1355 = vmatpush.msra.mxu3 %v326_v11  ;;  %v315_v9 = vld [vmem:[#allocation7 + $0x1c8] sm:$0xff] }
  0x3d   : > { %350 = vmatpush.msra.mxu0 %v325_v12  ;;  %1356 = vmatpush.msra.mxu1 %v325_v12 }
  0x3e   : > { %1357 = vmatpush.msra.mxu2 %v325_v12  ;;  %1358 = vmatpush.msra.mxu3 %v325_v12 }
  0x3f   : > { %351 = vmatpush.msra.mxu0 %v324_v13  ;;  %1359 = vmatpush.msra.mxu1 %v324_v13 }
  0x40   : > { %1360 = vmatpush.msra.mxu2 %v324_v13  ;;  %1361 = vmatpush.msra.mxu3 %v324_v13 }
  0x41   : > { %352 = vmatpush.msra.mxu0 %v323_v14  ;;  %1362 = vmatpush.msra.mxu1 %v323_v14 }
  0x42   : > { %1363 = vmatpush.msra.mxu2 %v323_v14  ;;  %1364 = vmatpush.msra.mxu3 %v323_v14 }
  0x43   : > { %353 = vmatpush.msra.mxu0 %v322_v15  ;;  %1365 = vmatpush.msra.mxu1 %v322_v15 }
  0x44   : > { %354 = vmatmul.f32.vlgmr.msra.gmra.mxu0 %v258_v16  ;;  %402 = vmatmul.f32.vlgmr.msra.gmra.mxu1 %v274_v17  ;;  %v304_v16 = vld [vmem:[#allocation7 + $0x170] sm:$0xff] }
  0x45   : > { %1366 = vmatpush.msra.mxu2 %v322_v15  ;;  %1367 = vmatpush.msra.mxu3 %v322_v15  ;;  %v316_v17 = vld [vmem:[#allocation7 + $0x1d0] sm:$0xff] }
  0x46   : > { %450 = vmatmul.f32.vlgmr.msra.gmra.mxu2 %v290_v24  ;;  %498 = vmatmul.f32.vlgmr.msra.gmra.mxu3 %v306_v37  ;;  %v317_v24 = vld [vmem:[#allocation7 + $0x1d8] sm:$0xff]  ;;  %v319_v37 = vld [vmem:[#allocation7 + $0x1e8] sm:$0xff] }
  0x4c   : > { %357 = vmatmul.f32.gmra.mxu0 %v259_v18  ;;  %405 = vmatmul.f32.gmra.mxu1 %v275_v19 }
  0x4e   : > { %453 = vmatmul.f32.gmra.mxu2 %v291_v27  ;;  %501 = vmatmul.f32.gmra.mxu3 %v307_v41  ;;  %v320_v41 = vld [vmem:[#allocation7 + $0x1f0] sm:$0xff] }
  0x54   : > { %360 = vmatmul.f32.gmra.mxu0 %v260_v20  ;;  %408 = vmatmul.f32.gmra.mxu1 %v276_v21 }
  0x56   : > { %456 = vmatmul.f32.gmra.mxu2 %v292_v30  ;;  %504 = vmatmul.f32.gmra.mxu3 %v308_v45  ;;  %v318_v30 = vld [vmem:[#allocation7 + $0x1e0] sm:$0xff]  ;;  %v321_v45 = vld [vmem:[#allocation7 + $0x1f8] sm:$0xff] }
  0x5c   : > { %363 = vmatmul.f32.gmra.mxu0 %v261_v22  ;;  %411 = vmatmul.f32.gmra.mxu1 %v277_v23  ;;  %v305_v23 = vld [vmem:[#allocation7 + $0x178] sm:$0xff] }
  0x5e   : > { %459 = vmatmul.f32.gmra.mxu2 %v293_v33  ;;  %507 = vmatmul.f32.gmra.mxu3 %v309_v49 }
  0x64   : > { %366 = vmatmul.f32.gmra.mxu0 %v262_v25  ;;  %414 = vmatmul.f32.gmra.mxu1 %v278_v26 }
  0x66   : > { %462 = vmatmul.f32.gmra.mxu2 %v294_v36  ;;  %510 = vmatmul.f32.gmra.mxu3 %v310_v53 }
  0x6c   : > { %369 = vmatmul.f32.gmra.mxu0 %v263_v28  ;;  %417 = vmatmul.f32.gmra.mxu1 %v279_v29 }
  0x6e   : > { %465 = vmatmul.f32.gmra.mxu2 %v295_v40  ;;  %513 = vmatmul.f32.gmra.mxu3 %v311_v57 }
  0x74   : > { %372 = vmatmul.f32.gmra.mxu0 %v264_v31  ;;  %420 = vmatmul.f32.gmra.mxu1 %v280_v32 }
  0x76   : > { %468 = vmatmul.f32.gmra.mxu2 %v296_v44  ;;  %516 = vmatmul.f32.gmra.mxu3 %v312_v61 }
  0x7c   : > { %375 = vmatmul.f32.gmra.mxu0 %v265_v34  ;;  %423 = vmatmul.f32.gmra.mxu1 %v281_v35 }
  0x7e   : > { %471 = vmatmul.f32.gmra.mxu2 %v297_v48  ;;  %519 = vmatmul.f32.gmra.mxu3 %v313_v1 }
  0x84   : > { %378 = vmatmul.f32.gmra.mxu0 %v266_v38  ;;  %426 = vmatmul.f32.gmra.mxu1 %v282_v39 }
  0x86   : > { %474 = vmatmul.f32.gmra.mxu2 %v298_v52  ;;  %522 = vmatmul.f32.gmra.mxu3 %v314_v5 }
  0x8c   : > { %381 = vmatmul.f32.gmra.mxu0 %v267_v42  ;;  %429 = vmatmul.f32.gmra.mxu1 %v283_v43 }
  0x8e   : > { %477 = vmatmul.f32.gmra.mxu2 %v299_v56  ;;  %525 = vmatmul.f32.gmra.mxu3 %v315_v9 }
  0x94   : > { %384 = vmatmul.f32.gmra.mxu0 %v268_v46  ;;  %432 = vmatmul.f32.gmra.mxu1 %v284_v47 }
  0x96   : > { %480 = vmatmul.f32.gmra.mxu2 %v300_v60  ;;  %528 = vmatmul.f32.gmra.mxu3 %v316_v17 }
  0x9c   : > { %387 = vmatmul.f32.gmra.mxu0 %v269_v50  ;;  %435 = vmatmul.f32.gmra.mxu1 %v285_v51 }
  0x9e   : > { %483 = vmatmul.f32.gmra.mxu2 %v301_v0  ;;  %531 = vmatmul.f32.gmra.mxu3 %v317_v24 }
  0xa4   : > { %390 = vmatmul.f32.gmra.mxu0 %v270_v54  ;;  %438 = vmatmul.f32.gmra.mxu1 %v286_v55 }
  0xa6   : > { %486 = vmatmul.f32.gmra.mxu2 %v302_v4  ;;  %534 = vmatmul.f32.gmra.mxu3 %v318_v30 }
  0xac   : > { %393 = vmatmul.f32.gmra.mxu0 %v271_v58  ;;  %441 = vmatmul.f32.gmra.mxu1 %v287_v59 }
  0xae   : > { %489 = vmatmul.f32.gmra.mxu2 %v303_v8  ;;  %537 = vmatmul.f32.gmra.mxu3 %v319_v37 }
  0xb4   : > { %396 = vmatmul.f32.gmra.mxu0 %v272_v62  ;;  %444 = vmatmul.f32.gmra.mxu1 %v288_v63 }
  0xb6   : > { %492 = vmatmul.f32.gmra.mxu2 %v304_v16  ;;  %540 = vmatmul.f32.gmra.mxu3 %v320_v41 }
  0xbc   : > { %399 = vmatmul.f32.gmra.mxu0 %v273_v2  ;;  %447 = vmatmul.f32.gmra.mxu1 %v289_v3 }
  0xbe   : > { %495 = vmatmul.f32.gmra.mxu2 %v305_v23  ;;  %543 = vmatmul.f32.gmra.mxu3 %v321_v45 }
  0xc1   : > { %v355_v6 = vpop.f32.mrf.mxu0  ;;  %v1688_v7 = vpop.f32.mrf.mxu1 }
  0xc2   : > { %548 = vst [vmem:[#allocation2 + $0xb0] sm:$0xff] %v355_v6  ;;  %v685_v12 = vmul.f32 %v355_v6, %v355_v6 }
  0xc3   : > { %564 = vst [vmem:[#allocation2 + $0xe0] sm:$0xff] %v1688_v7 }
  0xc9   : > { %v358_v10 = vpop.f32.mrf.mxu0  ;;  %v1691_v11 = vpop.f32.mrf.mxu1 }
  0xca   : > { %549 = vst [vmem:[#allocation2 + $0x1b0] sm:$0xff] %v358_v10  ;;  %v613_v13 = vadd.f32 %v358_v10, %v355_v6  ;;  %v686_v14 = vmul.f32 %v358_v10, %v358_v10  ;;  %v1704_v35 = vpop.f32.mrf.mxu2  ;;  %v1735_v52 = vpop.f32.mrf.mxu3 }
  0xcb   : > { %565 = vst [vmem:[#allocation2 + $0x188] sm:$0xff] %v1691_v11 }
  0xcc   : > { %v749_v15 = vadd.f32 %v686_v14, %v685_v12  ;;  %580 = vst [vmem:[#allocation2 + $0x148] sm:$0xff] %v1704_v35 }
  0xcd   : > { %596 = vst [vmem:[#allocation2 + $0xb8] sm:$0xff] %v1735_v52 }
  0xd1   : > { %v361_v18 = vpop.f32.mrf.mxu0  ;;  %v1694_v19 = vpop.f32.mrf.mxu1 }
  0xd2   : > { %550 = vst [vmem:[#allocation2 + $0xd8] sm:$0xff] %v361_v18  ;;  %v614_v20 = vadd.f32 %v613_v13, %v361_v18  ;;  %v687_v21 = vmul.f32 %v361_v18, %v361_v18  ;;  %v1715_v40 = vpop.f32.mrf.mxu2  ;;  %v1744_v56 = vpop.f32.mrf.mxu3 }
  0xd3   : > { %566 = vst [vmem:[#allocation2 + $0x138] sm:$0xff] %v1694_v19 }
  0xd4   : > { %v750_v22 = vadd.f32 %v749_v15, %v687_v21  ;;  %581 = vst [vmem:[#allocation2 + $0x1d0] sm:$0xff] %v1715_v40 }
  0xd5   : > { %597 = vst [vmem:[#allocation2 + $0x88] sm:$0xff] %v1744_v56 }
  0xd9   : > { %v364_v25 = vpop.f32.mrf.mxu0  ;;  %v1697_v26 = vpop.f32.mrf.mxu1 }
  0xda   : > { %551 = vst [vmem:[#allocation2 + $0x18] sm:$0xff] %v364_v25  ;;  %v615_v27 = vadd.f32 %v614_v20, %v364_v25  ;;  %v688_v28 = vmul.f32 %v364_v25, %v364_v25  ;;  %v1721_v44 = vpop.f32.mrf.mxu2  ;;  %v1753_v60 = vpop.f32.mrf.mxu3 }
  0xdb   : > { %567 = vst [vmem:[#allocation2 + $0x140] sm:$0xff] %v1697_v26 }
  0xdc   : > { %v751_v29 = vadd.f32 %v750_v22, %v688_v28  ;;  %582 = vst [vmem:[#allocation2 + $0x100] sm:$0xff] %v1721_v44 }
  0xdd   : > { %598 = vst [vmem:[#allocation2 + $0xa8] sm:$0xff] %v1753_v60 }
  0xe1   : > { %v367_v31 = vpop.f32.mrf.mxu0  ;;  %v1700_v32 = vpop.f32.mrf.mxu1 }
  0xe2   : > { %552 = vst [vmem:[#allocation2 + $0x50] sm:$0xff] %v367_v31  ;;  %v1702_v33 = vadd.f32 %v615_v27, %v367_v31  ;;  %v689_v34 = vmul.f32 %v367_v31, %v367_v31  ;;  %v1727_v48 = vpop.f32.mrf.mxu2  ;;  %v1762_v0 = vpop.f32.mrf.mxu3 }
  0xe3   : > { %568 = vst [vmem:[#allocation2 + $0x80] sm:$0xff] %v1700_v32 }
  0xe4   : > { %v1707_v36 = vadd.f32 %v751_v29, %v689_v34  ;;  %583 = vst [vmem:[#allocation2 + $0xc8] sm:$0xff] %v1727_v48 }
  0xe5   : > { %599 = vst [vmem:[#allocation2 + $0x1c8] sm:$0xff] %v1762_v0 }
  0xe9   : > { %v1710_v38 = vpop.f32.mrf.mxu0  ;;  %v1712_v39 = vpop.f32.mrf.mxu1 }
  0xea   : > { %553 = vst [vmem:[#allocation2 + $0x168] sm:$0xff] %v1710_v38  ;;  %v1733_v51 = vpop.f32.mrf.mxu2  ;;  %v1771_v4 = vpop.f32.mrf.mxu3  ;;  %v690_v5 = vmul.f32 %v1710_v38, %v1710_v38  ;;  %v617_v6 = vadd.f32 %v1702_v33, %v1710_v38 }
  0xeb   : > { %569 = vst [vmem:[#allocation2 + $0x1a8] sm:$0xff] %v1712_v39 }
  0xec   : > { %584 = vst [vmem:[#allocation2 + $0x40] sm:$0xff] %v1733_v51  ;;  %v753_v9 = vadd.f32 %v1707_v36, %v690_v5 }
  0xed   : > { %600 = vst [vmem:[#allocation2 + $0x170] sm:$0xff] %v1771_v4 }
  0xf1   : > { %v373_v42 = vpop.f32.mrf.mxu0  ;;  %v1719_v43 = vpop.f32.mrf.mxu1 }
  0xf2   : > { %554 = vst [vmem:[#allocation2 + $0x130] sm:$0xff] %v373_v42  ;;  %v1742_v55 = vpop.f32.mrf.mxu2  ;;  %v691_v8 = vmul.f32 %v373_v42, %v373_v42  ;;  %v618_v10 = vadd.f32 %v617_v6, %v373_v42  ;;  %v1785_v20 = vpop.f32.mrf.mxu3 }
  0xf3   : > { %570 = vst [vmem:[#allocation2 + $0x1b8] sm:$0xff] %v1719_v43 }
  0xf4   : > { %585 = vst [vmem:[#allocation2 + $0x1f8] sm:$0xff] %v1742_v55  ;;  %v754_v15 = vadd.f32 %v753_v9, %v691_v8 }
  0xf5   : > { %601 = vst [vmem:[#allocation2 + $0x178] sm:$0xff] %v1785_v20 }
  0xf9   : > { %v376_v46 = vpop.f32.mrf.mxu0  ;;  %v1725_v47 = vpop.f32.mrf.mxu1 }
  0xfa   : > { %555 = vst [vmem:[#allocation2 + $0x48] sm:$0xff] %v376_v46  ;;  %v1751_v59 = vpop.f32.mrf.mxu2  ;;  %v692_v12 = vmul.f32 %v376_v46, %v376_v46  ;;  %v619_v16 = vadd.f32 %v618_v10, %v376_v46  ;;  %v1794_v41 = vpop.f32.mrf.mxu3 }
  0xfb   : > { %571 = vst [vmem:[#allocation2 + $0x28] sm:$0xff] %v1725_v47 }
  0xfc   : > { %586 = vst [vmem:[#allocation2 + $0x20] sm:$0xff] %v1751_v59  ;;  %v755_v21 = vadd.f32 %v754_v15, %v692_v12 }
  0xfd   : > { %602 = vst [vmem:[#allocation2 + $0x68] sm:$0xff] %v1794_v41 }
 0x101   : > { %v379_v49 = vpop.f32.mrf.mxu0  ;;  %v1731_v50 = vpop.f32.mrf.mxu1 }
 0x102   : > { %556 = vst [vmem:[#allocation2 + $0x180] sm:$0xff] %v379_v49  ;;  %v1760_v63 = vpop.f32.mrf.mxu2  ;;  %v693_v17 = vmul.f32 %v379_v49, %v379_v49  ;;  %v620_v22 = vadd.f32 %v619_v16, %v379_v49  ;;  %v701_v16 = vmul.f32 %v1688_v7, %v1688_v7 }
 0x103   : > { %572 = vst [vmem:[#allocation2 + $0x1e8] sm:$0xff] %v1731_v50 }
 0x104   : > { %587 = vst [vmem:[#allocation2 + $0x128] sm:$0xff] %v1760_v63  ;;  %v756_v24 = vadd.f32 %v755_v21, %v693_v17  ;;  %v702_v21 = vmul.f32 %v1691_v11, %v1691_v11 }
 0x109   : > { %v382_v53 = vpop.f32.mrf.mxu0  ;;  %v1740_v54 = vpop.f32.mrf.mxu1 }
 0x10a   : > { %557 = vst [vmem:[#allocation2 + $0x110] sm:$0xff] %v382_v53  ;;  %v1769_v3 = vpop.f32.mrf.mxu2  ;;  %v694_v23 = vmul.f32 %v382_v53, %v382_v53  ;;  %v621_v25 = vadd.f32 %v620_v22, %v382_v53 }
 0x10b   : > { %573 = vst [vmem:[#allocation2 + $0xf8] sm:$0xff] %v1740_v54 }
 0x10c   : > { %588 = vst [vmem:[#allocation2 + $0x1a0] sm:$0xff] %v1769_v3  ;;  %v757_v28 = vadd.f32 %v756_v24, %v694_v23  ;;  %v703_v24 = vmul.f32 %v1694_v19, %v1694_v19 }
 0x111   : > { %v385_v57 = vpop.f32.mrf.mxu0  ;;  %v1749_v58 = vpop.f32.mrf.mxu1 }
 0x112   : > { %558 = vst [vmem:[#allocation2 + $0x118] sm:$0xff] %v385_v57  ;;  %v1783_v18 = vpop.f32.mrf.mxu2  ;;  %v695_v27 = vmul.f32 %v385_v57, %v385_v57  ;;  %v622_v29 = vadd.f32 %v621_v25, %v385_v57 }
 0x113   : > { %574 = vst [vmem:[#allocation2 + $0x160] sm:$0xff] %v1749_v58 }
 0x114   : > { %589 = vst [vmem:[#allocation2 + $0x1f0] sm:$0xff] %v1783_v18  ;;  %v758_v34 = vadd.f32 %v757_v28, %v695_v27 }
 0x119   : > { %v388_v61 = vpop.f32.mrf.mxu0  ;;  %v1758_v62 = vpop.f32.mrf.mxu1 }
 0x11a   : > { %559 = vst [vmem:[#allocation2 + $0x98] sm:$0xff] %v388_v61  ;;  %v696_v30 = vmul.f32 %v388_v61, %v388_v61  ;;  %v623_v36 = vadd.f32 %v622_v29, %v388_v61  ;;  %v1792_v38 = vpop.f32.mrf.mxu2 }
 0x11b   : > { %575 = vst [vmem:[#allocation2 + $0x30] sm:$0xff] %v1758_v62 }
 0x11c   : > { %v759_v42 = vadd.f32 %v758_v34, %v696_v30  ;;  %590 = vst [vmem:[#allocation2 + $0xe8] sm:$0xff] %v1792_v38 }
 0x121   : > { %v391_v1 = vpop.f32.mrf.mxu0  ;;  %v1767_v2 = vpop.f32.mrf.mxu1 }
 0x122   : > { %560 = vst [vmem:[#allocation2 + $0x120] sm:$0xff] %v391_v1  ;;  %v697_v37 = vmul.f32 %v391_v1, %v391_v1  ;;  %v624_v45 = vadd.f32 %v623_v36, %v391_v1  ;;  %v1801_v15 = vpop.f32.mrf.mxu2  ;;  %v1803_v1 = vpop.f32.mrf.mxu3 }
 0x123   : > { %576 = vst [vmem:[#allocation2 + $0x1e0] sm:$0xff] %v1767_v2 }
 0x124   : > { %v760_v49 = vadd.f32 %v759_v42, %v697_v37  ;;  %591 = vst [vmem:[#allocation2 + $0x78] sm:$0xff] %v1801_v15  ;;  %v707_v42 = vmul.f32 %v1719_v43, %v1719_v43 }
 0x125   : > { %603 = vst [vmem:[#allocation2 + $0x190] sm:$0xff] %v1803_v1 }
 0x129   : > { %v394_v13 = vpop.f32.mrf.mxu0  ;;  %v1781_v14 = vpop.f32.mrf.mxu1 }
 0x12a   : > { %561 = vst [vmem:[#allocation2 + $0x150] sm:$0xff] %v394_v13  ;;  %v698_v46 = vmul.f32 %v394_v13, %v394_v13  ;;  %v625_v53 = vadd.f32 %v624_v45, %v394_v13  ;;  %v1820_v30 = vpop.f32.mrf.mxu2 }
 0x12b   : > { %577 = vst [vmem:[#allocation2] sm:$0xff] %v1781_v14 }
 0x12c   : > { %v761_v5 = vadd.f32 %v760_v49, %v698_v46  ;;  %592 = vst [vmem:[#allocation2 + $0x70] sm:$0xff] %v1820_v30  ;;  %v708_v49 = vmul.f32 %v1725_v47, %v1725_v47 }
 0x131   : > { %v397_v31 = vpop.f32.mrf.mxu0  ;;  %v1790_v33 = vpop.f32.mrf.mxu1 }
 0x132   : > { %562 = vst [vmem:[#allocation2 + $0x108] sm:$0xff] %v397_v31  ;;  %v699_v57 = vmul.f32 %v397_v31, %v397_v31  ;;  %v626_v61 = vadd.f32 %v625_v53, %v397_v31  ;;  %v1822_v31 = vpop.f32.mrf.mxu3 }
 0x133   : > { %578 = vst [vmem:[#allocation2 + $0xf0] sm:$0xff] %v1790_v33 }
 0x134   : > { %v762_v9 = vadd.f32 %v761_v5, %v699_v57  ;;  %604 = vst [vmem:[#allocation2 + $0x198] sm:$0xff] %v1822_v31  ;;  %v1838_v57 = vpop.f32.mrf.mxu2 }
 0x135   : > { %593 = vst [vmem:[#allocation2 + $0x90] sm:$0xff] %v1838_v57 }
 0x139   : > { %v400_v6 = vpop.f32.mrf.mxu0  ;;  %v1799_v8 = vpop.f32.mrf.mxu1 }
 0x13a   : > { %563 = vst [vmem:[#allocation2 + $0x60] sm:$0xff] %v400_v6  ;;  %v627_v10 = vadd.f32 %v626_v61, %v400_v6  ;;  %v700_v12 = vmul.f32 %v400_v6, %v400_v6  ;;  %v1840_v5 = vpop.f32.mrf.mxu3 }
 0x13b   : > { %579 = vst [vmem:[#allocation2 + $0x8] sm:$0xff] %v1799_v8 }
 0x13c   : > { %v628_v13 = vadd.f32 %v627_v10, %v1688_v7  ;;  %v763_v17 = vadd.f32 %v762_v9, %v700_v12  ;;  %v704_v7 = vmul.f32 %v1697_v26, %v1697_v26  ;;  %605 = vst [vmem:[#allocation2 + $0x38] sm:$0xff] %v1840_v5  ;;  %v711_v10 = vmul.f32 %v1749_v58, %v1749_v58 }
 0x13e   : > { %v629_v22 = vadd.f32 %v628_v13, %v1691_v11  ;;  %v764_v23 = vadd.f32 %v763_v17, %v701_v16  ;;  %v705_v11 = vmul.f32 %v1700_v32, %v1700_v32 }
 0x140   : > { %v630_v25 = vadd.f32 %v629_v22, %v1694_v19  ;;  %v765_v27 = vadd.f32 %v764_v23, %v702_v21  ;;  %v706_v19 = vmul.f32 %v1712_v39, %v1712_v39  ;;  %v1856_v21 = vpop.f32.mrf.mxu2 }
 0x141   : > { %594 = vst [vmem:[#allocation2 + $0x1d8] sm:$0xff] %v1856_v21 }
 0x142   : > { %v631_v28 = vadd.f32 %v630_v25, %v1697_v26  ;;  %v766_v29 = vadd.f32 %v765_v27, %v703_v24  ;;  %v1858_v22 = vpop.f32.mrf.mxu3  ;;  %v713_v24 = vmul.f32 %v1767_v2, %v1767_v2 }
 0x143   : > { %606 = vst [vmem:[#allocation2 + $0xc0] sm:$0xff] %v1858_v22 }
 0x144   : > { %v632_v34 = vadd.f32 %v631_v28, %v1700_v32  ;;  %v767_v36 = vadd.f32 %v766_v29, %v704_v7  ;;  %v715_v28 = vmul.f32 %v1790_v33, %v1790_v33  ;;  %v716_v29 = vmul.f32 %v1799_v8, %v1799_v8 }
 0x146   : > { %v633_v26 = vadd.f32 %v632_v34, %v1712_v39  ;;  %v768_v37 = vadd.f32 %v767_v36, %v705_v11  ;;  %v709_v39 = vmul.f32 %v1731_v50, %v1731_v50 }
 0x148   : > { %v769_v45 = vadd.f32 %v768_v37, %v706_v19  ;;  %v634_v46 = vadd.f32 %v633_v26, %v1719_v43  ;;  %v710_v43 = vmul.f32 %v1740_v54, %v1740_v54  ;;  %v496_v34 = vpop.f32.mrf.mxu2  ;;  %v717_v19 = vmul.f32 %v1704_v35, %v1704_v35 }
 0x149   : > { %595 = vst [vmem:[#allocation2 + $0xd0] sm:$0xff] %v496_v34 }
 0x14a   : > { %v635_v32 = vadd.f32 %v634_v46, %v1725_v47  ;;  %v770_v53 = vadd.f32 %v769_v45, %v707_v42  ;;  %v1874_v36 = vpop.f32.mrf.mxu3 }
 0x14b   : > { %607 = vst [vmem:[#allocation2 + $0x1c0] sm:$0xff] %v1874_v36 }
 0x14c   : > { %v636_v61 = vadd.f32 %v635_v32, %v1731_v50  ;;  %v771_v6 = vadd.f32 %v770_v53, %v708_v49  ;;  %v712_v50 = vmul.f32 %v1758_v62, %v1758_v62  ;;  %v720_v49 = vmul.f32 %v1727_v48, %v1727_v48 }
 0x14e   : > { %v637_v47 = vadd.f32 %v636_v61, %v1740_v54  ;;  %v772_v9 = vadd.f32 %v771_v6, %v709_v39 }
 0x150   : > { %v638_v12 = vadd.f32 %v637_v47, %v1749_v58  ;;  %v773_v16 = vadd.f32 %v772_v9, %v710_v43 }
 0x152   : > { %v639_v13 = vadd.f32 %v638_v12, %v1758_v62  ;;  %v774_v17 = vadd.f32 %v773_v16, %v711_v10  ;;  %v714_v62 = vmul.f32 %v1781_v14, %v1781_v14  ;;  %v1889_v53 = vpop.f32.mrf.mxu3  ;;  %v724_v10 = vmul.f32 %v1760_v63, %v1760_v63 }
 0x153   : > { %608 = vst [vmem:[#allocation2 + $0x158] sm:$0xff] %v1889_v53 }
 0x154   : > { %v775_v54 = vadd.f32 %v774_v17, %v712_v50  ;;  %v640_v23 = vadd.f32 %v639_v13, %v1767_v2  ;;  %v726_v17 = vmul.f32 %v1783_v18, %v1783_v18 }
 0x156   : > { %v776_v58 = vadd.f32 %v775_v54, %v713_v24  ;;  %v641_v25 = vadd.f32 %v640_v23, %v1781_v14 }
 0x158   : > { %v777_v27 = vadd.f32 %v776_v58, %v714_v62  ;;  %v642_v7 = vadd.f32 %v641_v25, %v1790_v33  ;;  %v718_v33 = vmul.f32 %v1715_v40, %v1715_v40  ;;  %v728_v25 = vmul.f32 %v1801_v15, %v1801_v15 }
 0x15a   : > { %v778_v11 = vadd.f32 %v777_v27, %v715_v28  ;;  %v643_v2 = vadd.f32 %v642_v7, %v1799_v8  ;;  %v719_v8 = vmul.f32 %v1721_v44, %v1721_v44 }
 0x15c   : > { %v644_v14 = vadd.f32 %v643_v2, %v1704_v35  ;;  %v779_v26 = vadd.f32 %v778_v11, %v716_v29 }
 0x15e   : > { %v645_v37 = vadd.f32 %v644_v14, %v1715_v40  ;;  %v780_v42 = vadd.f32 %v779_v26, %v717_v19  ;;  %v721_v40 = vmul.f32 %v1733_v51, %v1733_v51  ;;  %v732_v19 = vmul.f32 %v496_v34, %v496_v34 }
 0x160   : > { %v646_v45 = vadd.f32 %v645_v37, %v1721_v44  ;;  %v781_v46 = vadd.f32 %v780_v42, %v718_v33  ;;  %v722_v44 = vmul.f32 %v1742_v55, %v1742_v55  ;;  %v1605_v37 = vmov 0.0  }
 0x161   : > { %256 = vst [vmem:[#allocation3] sm:$0x1] %v1605_v37 }
 0x162   : > { %v647_v35 = vadd.f32 %v646_v45, %v1727_v48  ;;  %v782_v32 = vadd.f32 %v781_v46, %v719_v8  ;;  %v723_v48 = vmul.f32 %v1751_v59, %v1751_v59  ;;  %257 = vst [vmem:[#allocation4] sm:$0x1] %v1605_v37 }
 0x164   : > { %v648_v39 = vadd.f32 %v647_v35, %v1733_v51  ;;  %v783_v61 = vadd.f32 %v782_v32, %v720_v49  ;;  %v1904_v51 = vpop.f32.mrf.mxu3  ;;  %v736_v35 = vmul.f32 %v1762_v0, %v1762_v0 }
 0x165   : > { %609 = vst [vmem:[#allocation2 + $0x10] sm:$0xff] %v1904_v51 }
 0x166   : > { %v649_v6 = vadd.f32 %v648_v39, %v1742_v55  ;;  %v784_v43 = vadd.f32 %v783_v61, %v721_v40  ;;  %v725_v55 = vmul.f32 %v1769_v3, %v1769_v3  ;;  %v737_v40 = vmul.f32 %v1771_v4, %v1771_v4 }
 0x168   : > { %v785_v47 = vadd.f32 %v784_v43, %v722_v44  ;;  %v650_v9 = vadd.f32 %v649_v6, %v1751_v59 }
 0x16a   : > { %v651_v12 = vadd.f32 %v650_v9, %v1760_v63  ;;  %v786_v16 = vadd.f32 %v785_v47, %v723_v48  ;;  %v727_v63 = vmul.f32 %v1792_v38, %v1792_v38 }
 0x16c   : > { %v652_v13 = vadd.f32 %v651_v12, %v1769_v3  ;;  %v787_v50 = vadd.f32 %v786_v16, %v724_v10  ;;  %v541_v3 = vpop.f32.mrf.mxu3 }
 0x16d   : > { %610 = vst [vmem:[#allocation2 + $0x58] sm:$0xff] %v541_v3 }
 0x16e   : > { %v653_v59 = vadd.f32 %v652_v13, %v1783_v18  ;;  %v788_v54 = vadd.f32 %v787_v50, %v725_v55  ;;  %v729_v18 = vmul.f32 %v1820_v30, %v1820_v30 }
 0x170   : > { %v654_v23 = vadd.f32 %v653_v59, %v1792_v38  ;;  %v789_v24 = vadd.f32 %v788_v54, %v726_v17  ;;  %v730_v38 = vmul.f32 %v1838_v57, %v1838_v57  ;;  %v744_v17 = vmul.f32 %v1874_v36, %v1874_v36 }
 0x172   : > { %v655_v58 = vadd.f32 %v654_v23, %v1801_v15  ;;  %v790_v62 = vadd.f32 %v789_v24, %v727_v63  ;;  %v731_v15 = vmul.f32 %v1856_v21, %v1856_v21  ;;  %v745_v63 = vmul.f32 %v1889_v53, %v1889_v53 }
 0x173   : > { %v746_v24 = vmul.f32 %v1904_v51, %v1904_v51 }
 0x174   : > { %v791_v27 = vadd.f32 %v790_v62, %v728_v25  ;;  %v656_v7 = vadd.f32 %v655_v58, %v1820_v30  ;;  %v544_v33 = vpop.f32.mrf.mxu3  ;;  %v733_v30 = vmul.f32 %v1735_v52, %v1735_v52  ;;  %v747_v25 = vmul.f32 %v541_v3, %v541_v3 }
 0x175   : > { %611 = vst [vmem:[#allocation2 + $0xa0] sm:$0xff] %v544_v33  ;;  %v748_v62 = vmul.f32 %v544_v33, %v544_v33 }
 0x176   : > { %v792_v28 = vadd.f32 %v791_v27, %v729_v18  ;;  %v657_v29 = vadd.f32 %v656_v7, %v1838_v57  ;;  %v734_v57 = vmul.f32 %v1744_v56, %v1744_v56 }
 0x178   : > { %v793_v11 = vadd.f32 %v792_v28, %v730_v38  ;;  %v658_v2 = vadd.f32 %v657_v29, %v1856_v21 }
 0x17a   : > { %v794_v14 = vadd.f32 %v793_v11, %v731_v15  ;;  %v659_v26 = vadd.f32 %v658_v2, %v496_v34  ;;  %v735_v34 = vmul.f32 %v1753_v60, %v1753_v60 }
 0x17c   : > { %v660_v42 = vadd.f32 %v659_v26, %v1735_v52  ;;  %v795_v8 = vadd.f32 %v794_v14, %v732_v19  ;;  %v612_v14 = vld [vmem:[#allocation3] sm:$0x1] }
 0x17e   : > { %v661_v45 = vadd.f32 %v660_v42, %v1744_v56  ;;  %v796_v21 = vadd.f32 %v795_v8, %v733_v30  ;;  %v738_v56 = vmul.f32 %v1785_v20, %v1785_v20 }
 0x180   : > { %v662_v46 = vadd.f32 %v661_v45, %v1753_v60  ;;  %v797_v49 = vadd.f32 %v796_v21, %v734_v57  ;;  %v739_v60 = vmul.f32 %v1794_v41, %v1794_v41 }
 0x182   : > { %v663_v52 = vadd.f32 %v662_v46, %v1762_v0  ;;  %v798_v32 = vadd.f32 %v797_v49, %v735_v34  ;;  %v740_v0 = vmul.f32 %v1803_v1, %v1803_v1 }
 0x184   : > { %v664_v39 = vadd.f32 %v663_v52, %v1771_v4  ;;  %v799_v61 = vadd.f32 %v798_v32, %v736_v35  ;;  %v741_v4 = vmul.f32 %v1822_v31, %v1822_v31 }
 0x186   : > { %v665_v44 = vadd.f32 %v664_v39, %v1785_v20  ;;  %v800_v6 = vadd.f32 %v799_v61, %v737_v40  ;;  %v742_v20 = vmul.f32 %v1840_v5, %v1840_v5 }
 0x188   : > { %v801_v43 = vadd.f32 %v800_v6, %v738_v56  ;;  %v666_v48 = vadd.f32 %v665_v44, %v1794_v41  ;;  %v743_v41 = vmul.f32 %v1858_v22, %v1858_v22 }
 0x18a   : > { %v667_v47 = vadd.f32 %v666_v48, %v1803_v1  ;;  %v802_v9 = vadd.f32 %v801_v43, %v739_v60 }
 0x18c   : > { %v668_v10 = vadd.f32 %v667_v47, %v1822_v31  ;;  %v803_v12 = vadd.f32 %v802_v9, %v740_v0 }
 0x18e   : > { %v669_v16 = vadd.f32 %v668_v10, %v1840_v5  ;;  %v804_v55 = vadd.f32 %v803_v12, %v741_v4 }
 0x190   : > { %v670_v13 = vadd.f32 %v669_v16, %v1858_v22  ;;  %v805_v50 = vadd.f32 %v804_v55, %v742_v20 }
 0x192   : > { %v671_v1 = vadd.f32 %v670_v13, %v1874_v36  ;;  %v806_v59 = vadd.f32 %v805_v50, %v743_v41 }
 0x194   : > { %v807_v31 = vadd.f32 %v806_v59, %v744_v17  ;;  %v672_v54 = vadd.f32 %v671_v1, %v1889_v53 }
 0x196   : > { %v808_v5 = vadd.f32 %v807_v31, %v745_v63  ;;  %v673_v23 = vadd.f32 %v672_v54, %v1904_v51  ;;  %v684_v51 = vld [vmem:[#allocation4] sm:$0x1] }
 0x198   : > { %v809_v22 = vadd.f32 %v808_v5, %v746_v24  ;;  %v674_v58 = vadd.f32 %v673_v23, %v541_v3 }
 0x19a   : > { %v810_v27 = vadd.f32 %v809_v22, %v747_v25  ;;  %v675_v7 = vadd.f32 %v674_v58, %v544_v33 }
 0x19c   : > { %v676_v36 = vrot.slane %v675_v7, 4  ;;  %v811_v18 = vadd.f32 %v810_v27, %v748_v62 }
 0x19e   : > { %v677_v28 = vadd.f32 %v676_v36, %v675_v7  ;;  %v812_v29 = vrot.slane %v811_v18, 4 }
 0x1a0   : > { %v678_v38 = vrot.slane %v677_v28, 2  ;;  %v813_v11 = vadd.f32 %v812_v29, %v811_v18 }
 0x1a2   : > { %v679_v2 = vadd.f32 %v678_v38, %v677_v28  ;;  %v814_v53 = vrot.slane %v813_v11, 2 }
 0x1a4   : > { %v680_v15 = vrot.slane %v679_v2, 1  ;;  %v815_v19 = vadd.f32 %v814_v53, %v813_v11 }
 0x1a6   : > { %v681_v26 = vadd.f32 %v680_v15, %v679_v2  ;;  %v816_v37 = vrot.slane %v815_v19, 1 }
 0x1a8   : > { %v682_v30 = vadd.f32 %v681_v26, %v612_v14  ;;  %v817_v42 = vadd.f32 %v816_v37, %v815_v19 }
 0x1aa   : > { %683 = vst [vmem:[#allocation3] sm:$0x1] %v682_v30  ;;  %v818_v3 = vadd.f32 %v817_v42, %v684_v51 }
 0x1ac   : > { %819 = vst [vmem:[#allocation4] sm:$0x1] %v818_v3 }
 0x1ad PF: > { %p1315_p12 = scmp.ne.s32.totalorder %s1590_s12, 1 }
 0x1af   : > { %823 = sbr.rel (%p1315_p12) target bundleno = 547 (0x223), region = 56 }
 0x1b4   : > { %v828_v33 = vld [vmem:[#allocation3] sm:$0x1]  ;;  %v830_v8 = vld [vmem:[#allocation4] sm:$0x1]  ;;  %v846_v56 = vld [vmem:[#allocation12] sm:$0x1] }
 0x1b5   : > { %v829_v57 = vmul.f32 0.001953125, %v828_v33  ;;  %v831_v45 = vmul.f32 0.001953125, %v830_v8  ;;  %v849_v60 = vld [vmem:[#allocation12 + $0x1] sm:$0x1]  ;;  %v854_v0 = vld [vmem:[#allocation2 + $0xb0] sm:$0xff]  ;;  %v856_v9 = vld [vmem:[#allocation2 + $0xd8] sm:$0xff] }
 0x1b6   : > { %v855_v47 = vld [vmem:[#allocation2 + $0x1b0] sm:$0xff]  ;;  %v857_v4 = vld [vmem:[#allocation2 + $0x18] sm:$0xff]  ;;  %v859_v20 = vld [vmem:[#allocation2 + $0x168] sm:$0xff] }
 0x1b7   : > { %v832_v21 = vmul.f32 %v829_v57, %v829_v57  ;;  %v858_v10 = vld [vmem:[#allocation2 + $0x50] sm:$0xff]  ;;  %v861_v1 = vld [vmem:[#allocation2 + $0x48] sm:$0xff]  ;;  %v862_v17 = vld [vmem:[#allocation2 + $0x180] sm:$0xff] }
 0x1b8   : > { %v860_v16 = vld [vmem:[#allocation2 + $0x130] sm:$0xff]  ;;  %v864_v23 = vld [vmem:[#allocation2 + $0x118] sm:$0xff]  ;;  %v866_v38 = vld [vmem:[#allocation2 + $0x120] sm:$0xff] }
 0x1b9   : > { %v833_v34 = vsub.f32 %v831_v45, %v832_v21  ;;  %v863_v54 = vld [vmem:[#allocation2 + $0x110] sm:$0xff]  ;;  %v865_v7 = vld [vmem:[#allocation2 + $0x98] sm:$0xff]  ;;  %v868_v51 = vld [vmem:[#allocation2 + $0x108] sm:$0xff] }
 0x1ba   : > { %v867_v19 = vld [vmem:[#allocation2 + $0x150] sm:$0xff]  ;;  %v869_v33 = vld [vmem:[#allocation2 + $0x60] sm:$0xff] }
 0x1bb   : > { %v834_v46 = vmax.f32 %v833_v34, 0.0  ;;  %v870_v21 = vld [vmem:[#allocation2 + $0xe0] sm:$0xff] }
 0x1bd   : > { %v835_v49 = vadd.f32 0.001, %v834_v46 }
 0x1bf   : > { %1444 = vrsqrt.f32 %v835_v49  ;;  %vm842_vm0 = vweird.f32 %v835_v49 }
 0x1c5   : > { %v1445_v35 = vpop.eup %1444 }
 0x1c6   : > { %v837_v52 = vmul.f32 %v1445_v35, %v835_v49  ;;  %vm843_vm1 = vweird.f32 %v1445_v35 }
 0x1c7   : > { %vm844_vm2 = vmor %vm842_vm0, %vm843_vm1 }
 0x1c8   : > { %v838_v32 = vmul.f32 %v1445_v35, %v837_v52 }
 0x1ca   : > { %v839_v40 = vmul.f32 0.5, %v838_v32 }
 0x1cc   : > { %v840_v39 = vsub.f32 1.5, %v839_v40 }
 0x1ce   : > { %v841_v61 = vmul.f32 %v1445_v35, %v840_v39  ;;  %v872_v39 = vld [vmem:[#allocation2 + $0x138] sm:$0xff] }
 0x1d0   : > { %v845_v44 = vsel %vm844_vm2, %v1445_v35, %v841_v61  ;;  %v871_v35 = vld [vmem:[#allocation2 + $0x188] sm:$0xff] }
 0x1d1   : > { %v847_v6 = vmul.f32 %v846_v56, %v845_v44 }
 0x1d3   : > { %848 = vst [vmem:[#allocation5] sm:$0x1] %v847_v6  ;;  %v850_v43 = vmul.f32 %v847_v6, %v829_v57  ;;  %v873_v6 = vld [vmem:[#allocation2 + $0x140] sm:$0xff] }
 0x1d5   : > { %v851_v48 = vsub.f32 %v849_v60, %v850_v43 }
 0x1d7   : > { %852 = vst [vmem:[#allocation6] sm:$0x1] %v851_v48 }
 0x1da   : > { %v1971_v12 = vld [vmem:[#allocation5] ss:$0 sm:$0xff] }
 0x1db   : > { %v922_v55 = vmul.f32 %v1971_v12, %v854_v0  ;;  %v923_v41 = vmul.f32 %v1971_v12, %v855_v47  ;;  %v924_v13 = vmul.f32 %v1971_v12, %v856_v9  ;;  %v925_v50 = vmul.f32 %v1971_v12, %v857_v4  ;;  %v874_v0 = vld [vmem:[#allocation2 + $0x80] sm:$0xff] }
 0x1dc   : > { %v926_v59 = vmul.f32 %v1971_v12, %v858_v10  ;;  %v927_v31 = vmul.f32 %v1971_v12, %v859_v20  ;;  %v928_v5 = vmul.f32 %v1971_v12, %v860_v16  ;;  %v929_v24 = vmul.f32 %v1971_v12, %v861_v1  ;;  %v875_v10 = vld [vmem:[#allocation2 + $0x1a8] sm:$0xff] }
 0x1dd   : > { %v930_v22 = vmul.f32 %v1971_v12, %v862_v17  ;;  %v931_v28 = vmul.f32 %v1971_v12, %v863_v54  ;;  %v932_v29 = vmul.f32 %v1971_v12, %v864_v23  ;;  %v933_v37 = vmul.f32 %v1971_v12, %v865_v7  ;;  %v877_v17 = vld [vmem:[#allocation2 + $0x28] sm:$0xff]  ;;  %v880_v7 = vld [vmem:[#allocation2 + $0x160] sm:$0xff] }
 0x1de   : > { %v1979_v63 = vld [vmem:[#allocation6] ss:$0 sm:$0xff]  ;;  %v934_v3 = vmul.f32 %v1971_v12, %v866_v38  ;;  %v935_v45 = vmul.f32 %v1971_v12, %v867_v19  ;;  %v936_v49 = vmul.f32 %v1971_v12, %v868_v51  ;;  %v937_v40 = vmul.f32 %v1971_v12, %v869_v33 }
 0x1df   : > { %v990_v58 = vadd.f32 %v1979_v63, %v922_v55  ;;  %v991_v25 = vadd.f32 %v1979_v63, %v923_v41  ;;  %v992_v62 = vadd.f32 %v1979_v63, %v924_v13  ;;  %v993_v27 = vadd.f32 %v1979_v63, %v925_v50  ;;  %v876_v41 = vld [vmem:[#allocation2 + $0x1b8] sm:$0xff] }
 0x1e0   : > { %v994_v36 = vadd.f32 %v1979_v63, %v926_v59  ;;  %v995_v18 = vadd.f32 %v1979_v63, %v927_v31  ;;  %v996_v15 = vadd.f32 %v1979_v63, %v928_v5  ;;  %v997_v26 = vadd.f32 %v1979_v63, %v929_v24  ;;  %v878_v5 = vld [vmem:[#allocation2 + $0x1e8] sm:$0xff] }
 0x1e1   : > { %v1054_v11 = vmax.f32 %v990_v58, 0.0  ;;  %v1055_v2 = vmax.f32 %v991_v25, 0.0  ;;  %v1056_v53 = vmax.f32 %v992_v62, 0.0  ;;  %v1057_v14 = vmax.f32 %v993_v27, 0.0  ;;  %v879_v58 = vld [vmem:[#allocation2 + $0xf8] sm:$0xff] }
 0x1e2   : > { %v1058_v30 = vmax.f32 %v994_v36, 0.0  ;;  %v998_v42 = vadd.f32 %v1979_v63, %v930_v22  ;;  %v1059_v8 = vmax.f32 %v995_v18, 0.0  ;;  %v999_v57 = vadd.f32 %v1979_v63, %v931_v28 }
 0x1e3   : > { %1118 = vst [vmem:[#allocation13] sm:$0xff] %v1054_v11  ;;  %v1060_v34 = vmax.f32 %v996_v15, 0.0  ;;  %v1000_v46 = vadd.f32 %v1979_v63, %v932_v29  ;;  %v1061_v52 = vmax.f32 %v997_v26, 0.0  ;;  %v1001_v32 = vadd.f32 %v1979_v63, %v933_v37  ;;  %v881_v29 = vld [vmem:[#allocation2 + $0x30] sm:$0xff]  ;;  %v883_v26 = vld [vmem:[#allocation2] sm:$0xff] }
 0x1e4   : > { %1119 = vst [vmem:[#allocation13 + $0x8] sm:$0xff] %v1055_v2  ;;  %v1062_v61 = vmax.f32 %v998_v42, 0.0  ;;  %v1002_v56 = vadd.f32 %v1979_v63, %v934_v3  ;;  %v938_v44 = vmul.f32 %v1971_v12, %v870_v21  ;;  %v1063_v60 = vmax.f32 %v999_v57, 0.0  ;;  %v884_v42 = vld [vmem:[#allocation2 + $0xf0] sm:$0xff]  ;;  %v885_v57 = vld [vmem:[#allocation2 + $0x8] sm:$0xff] }
 0x1e5   : > { %1120 = vst [vmem:[#allocation13 + $0x10] sm:$0xff] %v1056_v53  ;;  %v1003_v43 = vadd.f32 %v1979_v63, %v935_v45  ;;  %v939_v48 = vmul.f32 %v1971_v12, %v871_v35  ;;  %v1064_v47 = vmax.f32 %v1000_v46, 0.0  ;;  %v1004_v9 = vadd.f32 %v1979_v63, %v936_v49  ;;  %v882_v53 = vld [vmem:[#allocation2 + $0x1e0] sm:$0xff]  ;;  %v886_v46 = vld [vmem:[#allocation2 + $0x148] sm:$0xff] }
 0x1e6   : > { %1121 = vst [vmem:[#allocation13 + $0x18] sm:$0xff] %v1057_v14  ;;  %v940_v4 = vmul.f32 %v1971_v12, %v872_v39  ;;  %v1065_v20 = vmax.f32 %v1001_v32, 0.0  ;;  %v1005_v16 = vadd.f32 %v1979_v63, %v937_v40  ;;  %v941_v55 = vmul.f32 %v1971_v12, %v873_v6  ;;  %v887_v32 = vld [vmem:[#allocation2 + $0x1d0] sm:$0xff] }
 0x1e7   : > { %1122 = vst [vmem:[#allocation13 + $0x20] sm:$0xff] %v1058_v30  ;;  %v1066_v13 = vmax.f32 %v1002_v56, 0.0  ;;  %v1006_v50 = vadd.f32 %v1979_v63, %v938_v44  ;;  %v942_v1 = vmul.f32 %v1971_v12, %v874_v0  ;;  %v1067_v59 = vmax.f32 %v1003_v43, 0.0  ;;  %v888_v56 = vld [vmem:[#allocation2 + $0x100] sm:$0xff]  ;;  %v889_v43 = vld [vmem:[#allocation2 + $0xc8] sm:$0xff] }
 0x1e8   : > { %1123 = vst [vmem:[#allocation13 + $0x28] sm:$0xff] %v1059_v8  ;;  %v1007_v31 = vadd.f32 %v1979_v63, %v939_v48  ;;  %v943_v54 = vmul.f32 %v1971_v12, %v875_v10  ;;  %v1068_v23 = vmax.f32 %v1004_v9, 0.0  ;;  %v1008_v24 = vadd.f32 %v1979_v63, %v940_v4  ;;  %v890_v9 = vld [vmem:[#allocation2 + $0x40] sm:$0xff] }
 0x1e9   : > { %1124 = vst [vmem:[#allocation13 + $0x30] sm:$0xff] %v1060_v34  ;;  %v944_v22 = vmul.f32 %v1971_v12, %v876_v41  ;;  %v1069_v25 = vmax.f32 %v1005_v16, 0.0  ;;  %v1009_v62 = vadd.f32 %v1979_v63, %v941_v55  ;;  %v945_v27 = vmul.f32 %v1971_v12, %v877_v17  ;;  %v891_v16 = vld [vmem:[#allocation2 + $0x1f8] sm:$0xff] }
 0x1ea   : > { %1125 = vst [vmem:[#allocation13 + $0x38] sm:$0xff] %v1061_v52  ;;  %v1070_v36 = vmax.f32 %v1006_v50, 0.0  ;;  %v1010_v18 = vadd.f32 %v1979_v63, %v942_v1  ;;  %v946_v28 = vmul.f32 %v1971_v12, %v878_v5  ;;  %v1071_v38 = vmax.f32 %v1007_v31, 0.0  ;;  %v892_v50 = vld [vmem:[#allocation2 + $0x20] sm:$0xff]  ;;  %v893_v31 = vld [vmem:[#allocation2 + $0x128] sm:$0xff] }
 0x1eb   : > { %1126 = vst [vmem:[#allocation13 + $0x40] sm:$0xff] %v1062_v61  ;;  %v1011_v11 = vadd.f32 %v1979_v63, %v943_v54  ;;  %v947_v2 = vmul.f32 %v1971_v12, %v879_v58  ;;  %v1072_v15 = vmax.f32 %v1008_v24, 0.0  ;;  %v1012_v19 = vadd.f32 %v1979_v63, %v944_v22  ;;  %v894_v24 = vld [vmem:[#allocation2 + $0x1a0] sm:$0xff] }
 0x1ec   : > { %1127 = vst [vmem:[#allocation13 + $0x48] sm:$0xff] %v1063_v60  ;;  %v948_v14 = vmul.f32 %v1971_v12, %v880_v7  ;;  %v1073_v37 = vmax.f32 %v1009_v62, 0.0  ;;  %v1013_v51 = vadd.f32 %v1979_v63, %v945_v27  ;;  %v949_v30 = vmul.f32 %v1971_v12, %v881_v29  ;;  %v895_v62 = vld [vmem:[#allocation2 + $0x1f0] sm:$0xff] }
 0x1ed   : > { %1128 = vst [vmem:[#allocation13 + $0x50] sm:$0xff] %v1064_v47  ;;  %v1074_v3 = vmax.f32 %v1010_v18, 0.0  ;;  %v1014_v33 = vadd.f32 %v1979_v63, %v946_v28  ;;  %v950_v8 = vmul.f32 %v1971_v12, %v882_v53  ;;  %v1075_v45 = vmax.f32 %v1011_v11, 0.0  ;;  %v896_v18 = vld [vmem:[#allocation2 + $0xe8] sm:$0xff]  ;;  %v897_v11 = vld [vmem:[#allocation2 + $0x78] sm:$0xff] }
 0x1ee   : > { %1129 = vst [vmem:[#allocation13 + $0x58] sm:$0xff] %v1065_v20  ;;  %v1015_v21 = vadd.f32 %v1979_v63, %v947_v2  ;;  %v951_v34 = vmul.f32 %v1971_v12, %v883_v26  ;;  %v1076_v49 = vmax.f32 %v1012_v19, 0.0  ;;  %v1016_v35 = vadd.f32 %v1979_v63, %v948_v14  ;;  %v898_v19 = vld [vmem:[#allocation2 + $0x70] sm:$0xff] }
 0x1ef   : > { %1130 = vst [vmem:[#allocation13 + $0x60] sm:$0xff] %v1066_v13  ;;  %v952_v52 = vmul.f32 %v1971_v12, %v884_v42  ;;  %v1077_v40 = vmax.f32 %v1013_v51, 0.0  ;;  %v1017_v39 = vadd.f32 %v1979_v63, %v949_v30  ;;  %v953_v61 = vmul.f32 %v1971_v12, %v885_v57  ;;  %v899_v51 = vld [vmem:[#allocation2 + $0x90] sm:$0xff] }
 0x1f0   : > { %1131 = vst [vmem:[#allocation13 + $0x68] sm:$0xff] %v1067_v59  ;;  %v1078_v44 = vmax.f32 %v1014_v33, 0.0  ;;  %v1018_v6 = vadd.f32 %v1979_v63, %v950_v8  ;;  %v954_v60 = vmul.f32 %v1971_v12, %v886_v46  ;;  %v1079_v48 = vmax.f32 %v1015_v21, 0.0  ;;  %v900_v33 = vld [vmem:[#allocation2 + $0x1d8] sm:$0xff]  ;;  %v901_v21 = vld [vmem:[#allocation2 + $0xd0] sm:$0xff] }
 0x1f1   : > { %1132 = vst [vmem:[#allocation13 + $0x70] sm:$0xff] %v1068_v23  ;;  %v1019_v0 = vadd.f32 %v1979_v63, %v951_v34  ;;  %v955_v47 = vmul.f32 %v1971_v12, %v887_v32  ;;  %v1080_v4 = vmax.f32 %v1016_v35, 0.0  ;;  %v1020_v10 = vadd.f32 %v1979_v63, %v952_v52  ;;  %v917_v34 = vld [vmem:[#allocation2 + $0xa0] sm:$0xff]  ;;  %v902_v52 = vld [vmem:[#allocation2 + $0xb8] sm:$0xff] }
 0x1f2   : > { %1133 = vst [vmem:[#allocation13 + $0x78] sm:$0xff] %v1069_v25  ;;  %v956_v20 = vmul.f32 %v1971_v12, %v888_v56  ;;  %v1081_v55 = vmax.f32 %v1017_v39, 0.0  ;;  %v1021_v41 = vadd.f32 %v1979_v63, %v953_v61  ;;  %v957_v13 = vmul.f32 %v1971_v12, %v889_v43  ;;  %v903_v61 = vld [vmem:[#allocation2 + $0x88] sm:$0xff] }
 0x1f3   : > { %1134 = vst [vmem:[#allocation13 + $0x80] sm:$0xff] %v1070_v36  ;;  %v1082_v1 = vmax.f32 %v1018_v6, 0.0  ;;  %v1022_v17 = vadd.f32 %v1979_v63, %v954_v60  ;;  %v958_v59 = vmul.f32 %v1971_v12, %v890_v9  ;;  %v1083_v54 = vmax.f32 %v1019_v0, 0.0  ;;  %v904_v60 = vld [vmem:[#allocation2 + $0xa8] sm:$0xff] }
 0x1f4   : > { %1135 = vst [vmem:[#allocation13 + $0x88] sm:$0xff] %v1071_v38  ;;  %v1023_v5 = vadd.f32 %v1979_v63, %v955_v47  ;;  %v959_v23 = vmul.f32 %v1971_v12, %v891_v16  ;;  %v1084_v22 = vmax.f32 %v1020_v10, 0.0  ;;  %v1024_v58 = vadd.f32 %v1979_v63, %v956_v20  ;;  %v905_v9 = vld [vmem:[#allocation2 + $0x1c8] sm:$0xff]  ;;  %v906_v16 = vld [vmem:[#allocation2 + $0x170] sm:$0xff] }
 0x1f5   : > { %1136 = vst [vmem:[#allocation13 + $0x90] sm:$0xff] %v1072_v15  ;;  %v960_v25 = vmul.f32 %v1971_v12, %v892_v50  ;;  %v1085_v27 = vmax.f32 %v1021_v41, 0.0  ;;  %v1025_v7 = vadd.f32 %v1979_v63, %v957_v13  ;;  %v961_v36 = vmul.f32 %v1971_v12, %v893_v31 }
 0x1f6   : > { %1137 = vst [vmem:[#allocation13 + $0x98] sm:$0xff] %v1073_v37  ;;  %v1086_v28 = vmax.f32 %v1022_v17, 0.0  ;;  %v1026_v29 = vadd.f32 %v1979_v63, %v958_v59  ;;  %v962_v38 = vmul.f32 %v1971_v12, %v894_v24  ;;  %v1087_v2 = vmax.f32 %v1023_v5, 0.0 }
 0x1f7   : > { %1138 = vst [vmem:[#allocation13 + $0xa0] sm:$0xff] %v1074_v3  ;;  %v1027_v53 = vadd.f32 %v1979_v63, %v959_v23  ;;  %v963_v15 = vmul.f32 %v1971_v12, %v895_v62  ;;  %v1088_v14 = vmax.f32 %v1024_v58, 0.0  ;;  %v1028_v26 = vadd.f32 %v1979_v63, %v960_v25 }
 0x1f8   : > { %1139 = vst [vmem:[#allocation13 + $0xa8] sm:$0xff] %v1075_v45  ;;  %v964_v37 = vmul.f32 %v1971_v12, %v896_v18  ;;  %v1089_v30 = vmax.f32 %v1025_v7, 0.0  ;;  %v1029_v42 = vadd.f32 %v1979_v63, %v961_v36  ;;  %v965_v3 = vmul.f32 %v1971_v12, %v897_v11 }
 0x1f9   : > { %1140 = vst [vmem:[#allocation13 + $0xb0] sm:$0xff] %v1076_v49  ;;  %v1090_v8 = vmax.f32 %v1026_v29, 0.0  ;;  %v1030_v57 = vadd.f32 %v1979_v63, %v962_v38  ;;  %v966_v45 = vmul.f32 %v1971_v12, %v898_v19  ;;  %v1091_v46 = vmax.f32 %v1027_v53, 0.0 }
 0x1fa   : > { %1141 = vst [vmem:[#allocation13 + $0xb8] sm:$0xff] %v1077_v40  ;;  %v1031_v49 = vadd.f32 %v1979_v63, %v963_v15  ;;  %v967_v35 = vmul.f32 %v1971_v12, %v899_v51  ;;  %v1092_v32 = vmax.f32 %v1028_v26, 0.0  ;;  %v1032_v40 = vadd.f32 %v1979_v63, %v964_v37 }
 0x1fb   : > { %1142 = vst [vmem:[#allocation13 + $0xc0] sm:$0xff] %v1078_v44  ;;  %v968_v39 = vmul.f32 %v1971_v12, %v900_v33  ;;  %v1093_v56 = vmax.f32 %v1029_v42, 0.0  ;;  %v1033_v44 = vadd.f32 %v1979_v63, %v965_v3  ;;  %v969_v6 = vmul.f32 %v1971_v12, %v901_v21 }
 0x1fc   : > { %1143 = vst [vmem:[#allocation13 + $0xc8] sm:$0xff] %v1079_v48  ;;  %v985_v43 = vmul.f32 %v1971_v12, %v917_v34  ;;  %v1094_v48 = vmax.f32 %v1030_v57, 0.0  ;;  %v1034_v0 = vadd.f32 %v1979_v63, %v966_v45  ;;  %v970_v47 = vmul.f32 %v1971_v12, %v902_v52  ;;  %v916_v34 = vld [vmem:[#allocation2 + $0x58] sm:$0xff] }
 0x1fd   : > { %1144 = vst [vmem:[#allocation13 + $0xd0] sm:$0xff] %v1080_v4  ;;  %v1095_v4 = vmax.f32 %v1031_v49, 0.0  ;;  %v1035_v10 = vadd.f32 %v1979_v63, %v967_v35  ;;  %v971_v20 = vmul.f32 %v1971_v12, %v903_v61  ;;  %v1096_v41 = vmax.f32 %v1032_v40, 0.0 }
 0x1fe   : > { %1145 = vst [vmem:[#allocation13 + $0xd8] sm:$0xff] %v1081_v55  ;;  %v2073_v55 = vadd.f32 %v1979_v63, %v985_v43  ;;  %v1036_v13 = vadd.f32 %v1979_v63, %v968_v39  ;;  %v972_v50 = vmul.f32 %v1971_v12, %v904_v60  ;;  %v1097_v17 = vmax.f32 %v1033_v44, 0.0 }
 0x1ff   : > { %1146 = vst [vmem:[#allocation13 + $0xe0] sm:$0xff] %v1082_v1  ;;  %v907_v1 = vld [vmem:[#allocation2 + $0x178] sm:$0xff]  ;;  %v1037_v59 = vadd.f32 %v1979_v63, %v969_v6  ;;  %v973_v31 = vmul.f32 %v1971_v12, %v905_v9  ;;  %v1098_v5 = vmax.f32 %v1034_v0, 0.0  ;;  %v1038_v23 = vadd.f32 %v1979_v63, %v970_v47 }
 0x200   : > { %1147 = vst [vmem:[#allocation13 + $0xe8] sm:$0xff] %v1083_v54  ;;  %v908_v54 = vld [vmem:[#allocation2 + $0x68] sm:$0xff]  ;;  %v974_v24 = vmul.f32 %v1971_v12, %v906_v16  ;;  %v1099_v58 = vmax.f32 %v1035_v10, 0.0  ;;  %v1039_v25 = vadd.f32 %v1979_v63, %v971_v20  ;;  %v975_v62 = vmul.f32 %v1971_v12, %v907_v1 }
 0x201   : > { %1148 = vst [vmem:[#allocation13 + $0xf0] sm:$0xff] %v1084_v22  ;;  %v909_v22 = vld [vmem:[#allocation2 + $0x190] sm:$0xff]  ;;  %v1100_v7 = vmax.f32 %v1036_v13, 0.0  ;;  %v1040_v36 = vadd.f32 %v1979_v63, %v972_v50  ;;  %v976_v18 = vmul.f32 %v1971_v12, %v908_v54  ;;  %v1101_v29 = vmax.f32 %v1037_v59, 0.0 }
 0x202   : > { %1149 = vst [vmem:[#allocation13 + $0xf8] sm:$0xff] %v1085_v27  ;;  %v910_v27 = vld [vmem:[#allocation2 + $0x198] sm:$0xff]  ;;  %v1041_v38 = vadd.f32 %v1979_v63, %v973_v31  ;;  %v977_v11 = vmul.f32 %v1971_v12, %v909_v22  ;;  %v1102_v53 = vmax.f32 %v1038_v23, 0.0  ;;  %v1042_v15 = vadd.f32 %v1979_v63, %v974_v24 }
 0x203   : > { %1150 = vst [vmem:[#allocation13 + $0x100] sm:$0xff] %v1086_v28  ;;  %v911_v28 = vld [vmem:[#allocation2 + $0x38] sm:$0xff]  ;;  %v978_v19 = vmul.f32 %v1971_v12, %v910_v27  ;;  %v1103_v26 = vmax.f32 %v1039_v25, 0.0  ;;  %v1043_v37 = vadd.f32 %v1979_v63, %v975_v62  ;;  %v1104_v42 = vmax.f32 %v1040_v36, 0.0 }
 0x204   : > { %1151 = vst [vmem:[#allocation13 + $0x108] sm:$0xff] %v1087_v2  ;;  %v912_v2 = vld [vmem:[#allocation2 + $0xc0] sm:$0xff]  ;;  %v979_v51 = vmul.f32 %v1971_v12, %v911_v28  ;;  %v1044_v3 = vadd.f32 %v1979_v63, %v976_v18  ;;  %v1105_v57 = vmax.f32 %v1041_v38, 0.0  ;;  %v1045_v45 = vadd.f32 %v1979_v63, %v977_v11 }
 0x205   : > { %1152 = vst [vmem:[#allocation13 + $0x110] sm:$0xff] %v1088_v14  ;;  %v913_v14 = vld [vmem:[#allocation2 + $0x1c0] sm:$0xff]  ;;  %v980_v33 = vmul.f32 %v1971_v12, %v912_v2  ;;  %v1046_v49 = vadd.f32 %v1979_v63, %v978_v19  ;;  %v1107_v52 = vmax.f32 %v1043_v37, 0.0  ;;  %v1117_v16 = vmax.f32 %v2073_v55, 0.0 }
 0x206   : > { %1153 = vst [vmem:[#allocation13 + $0x118] sm:$0xff] %v1089_v30  ;;  %v914_v30 = vld [vmem:[#allocation2 + $0x158] sm:$0xff]  ;;  %v981_v21 = vmul.f32 %v1971_v12, %v913_v14  ;;  %v1108_v39 = vmax.f32 %v1044_v3, 0.0  ;;  %v1109_v44 = vmax.f32 %v1045_v45, 0.0 }
 0x207   : > { %1154 = vst [vmem:[#allocation13 + $0x120] sm:$0xff] %v1090_v8  ;;  %v915_v8 = vld [vmem:[#allocation2 + $0x10] sm:$0xff]  ;;  %v982_v35 = vmul.f32 %v1971_v12, %v914_v30  ;;  %v1048_v61 = vadd.f32 %v1979_v63, %v980_v33  ;;  %v1110_v60 = vmax.f32 %v1046_v49, 0.0 }
 0x208   : > { %1155 = vst [vmem:[#allocation13 + $0x128] sm:$0xff] %v1091_v46  ;;  %v1106_v46 = vmax.f32 %v1042_v15, 0.0  ;;  %v983_v40 = vmul.f32 %v1971_v12, %v915_v8  ;;  %v1049_v6 = vadd.f32 %v1979_v63, %v981_v21 }
 0x209   : > { %1156 = vst [vmem:[#allocation13 + $0x130] sm:$0xff] %v1092_v32  ;;  %v1047_v32 = vadd.f32 %v1979_v63, %v979_v51  ;;  %v1050_v43 = vadd.f32 %v1979_v63, %v982_v35  ;;  %v1112_v47 = vmax.f32 %v1048_v61, 0.0 }
 0x20a   : > { %1157 = vst [vmem:[#allocation13 + $0x138] sm:$0xff] %v1093_v56  ;;  %v984_v56 = vmul.f32 %v1971_v12, %v916_v34  ;;  %v1051_v0 = vadd.f32 %v1979_v63, %v983_v40 }
 0x20b   : > { %1158 = vst [vmem:[#allocation13 + $0x140] sm:$0xff] %v1094_v48  ;;  %v1111_v48 = vmax.f32 %v1047_v32, 0.0  ;;  %v1114_v12 = vmax.f32 %v1050_v43, 0.0 }
 0x20c   : > { %1159 = vst [vmem:[#allocation13 + $0x148] sm:$0xff] %v1095_v4  ;;  %v1052_v9 = vadd.f32 %v1979_v63, %v984_v56  ;;  %v1113_v4 = vmax.f32 %v1049_v6, 0.0  ;;  %v1115_v10 = vmax.f32 %v1051_v0, 0.0 }
 0x20d   : > { %1160 = vst [vmem:[#allocation13 + $0x150] sm:$0xff] %v1096_v41 }
 0x20e   : > { %1161 = vst [vmem:[#allocation13 + $0x158] sm:$0xff] %v1097_v17  ;;  %v1116_v20 = vmax.f32 %v1052_v9, 0.0 }
 0x20f   : > { %1162 = vst [vmem:[#allocation13 + $0x160] sm:$0xff] %v1098_v5 }
 0x210   : > { %1163 = vst [vmem:[#allocation13 + $0x168] sm:$0xff] %v1099_v58 }
 0x211   : > { %1164 = vst [vmem:[#allocation13 + $0x170] sm:$0xff] %v1100_v7 }
 0x212   : > { %1165 = vst [vmem:[#allocation13 + $0x178] sm:$0xff] %v1101_v29 }
 0x213   : > { %1166 = vst [vmem:[#allocation13 + $0x180] sm:$0xff] %v1102_v53 }
 0x214   : > { %1167 = vst [vmem:[#allocation13 + $0x188] sm:$0xff] %v1103_v26 }
 0x215   : > { %1168 = vst [vmem:[#allocation13 + $0x190] sm:$0xff] %v1104_v42 }
 0x216   : > { %1169 = vst [vmem:[#allocation13 + $0x198] sm:$0xff] %v1105_v57 }
 0x217   : > { %1170 = vst [vmem:[#allocation13 + $0x1a0] sm:$0xff] %v1106_v46 }
 0x218   : > { %1171 = vst [vmem:[#allocation13 + $0x1a8] sm:$0xff] %v1107_v52 }
 0x219   : > { %1172 = vst [vmem:[#allocation13 + $0x1b0] sm:$0xff] %v1108_v39 }
 0x21a   : > { %1173 = vst [vmem:[#allocation13 + $0x1b8] sm:$0xff] %v1109_v44 }
 0x21b   : > { %1174 = vst [vmem:[#allocation13 + $0x1c0] sm:$0xff] %v1110_v60 }
 0x21c   : > { %1175 = vst [vmem:[#allocation13 + $0x1c8] sm:$0xff] %v1111_v48 }
 0x21d   : > { %1176 = vst [vmem:[#allocation13 + $0x1d0] sm:$0xff] %v1112_v47 }
 0x21e   : > { %1177 = vst [vmem:[#allocation13 + $0x1d8] sm:$0xff] %v1113_v4 }
 0x21f   : > { %1178 = vst [vmem:[#allocation13 + $0x1e0] sm:$0xff] %v1114_v12 }
 0x220   : > { %1179 = vst [vmem:[#allocation13 + $0x1e8] sm:$0xff] %v1115_v10 }
 0x221   : > { %1180 = vst [vmem:[#allocation13 + $0x1f0] sm:$0xff] %v1116_v20 }
 0x222   : > { %1181 = vst [vmem:[#allocation13 + $0x1f8] sm:$0xff] %v1117_v16 }
 0x223 PF: > { %p1406_p13 = scmp.eq.s32.totalorder %s1303_s15, 1  ;;  %s1198_s12 = sshll.u32 %s2127_s3, 4  ;;  %s1199_s12 = int_to_ptr.hbm [resolvable:$true] %s1198_s12 }
 0x224   : > { %s1606_s18 = smov [#allocation13]   ;;  %s1607_s20 = smov 128  }
 0x225   : > { %s1196_s19 = sshll.u32 %s1606_s18, 4  ;;  %s1608_s21 = smov 8   ;;  %s1197_s19 = int_to_ptr.vmem [resolvable:$true] %s1196_s19 }
 0x226   : > { %1381 = dma.vmem_to_hbm [thread:$0]  (%p1406_p13), %s1197_s19, 8192, %s1199_s12, [#allocation9], %s1607_s20, %s1607_s20, %s1608_s21  }
 0x227 PF: > { %p1408_p0 = scmp.eq.s32.totalorder %s1304_s16, 1 }
 0x229   : > { %p1396_p1 = pnand %p1408_p0, %p1308_p7 }
 0x22b   : > { %p1397_p2 = pneg %p1396_p1 }
 0x22d   : > { %1585 = dma.done.wait (%p1397_p2), [#allocation9], 8192  }
 0x22e   : > { %1587 = vsyncadd (%p1397_p2), [#allocation9], 4294959104  ;;  %s20_s14 = sadd.s32 1, %s1598_s14   ;;  %s2130_s12 = smov %s1594_s13 }
 0x22f   : > { %p17_p3 = scmp.ge.s32.totalorder %s20_s14, 4   ;;  %s2131_s13 = smov %s2133_s17 }
 0x231   :  { %19 = sbr.rel (!%p17_p3) target bundleno = 6 (0x6), region = 103 }
 0x236   :  { %1220 = vsyncpa [#allocation8], 1 }
 0x237   :  { %1222 = vsyncpa [#allocation8 + $0x1], 1 }
 0x238   :  { %1223 = vsyncpa [#allocation11], 1 }
 0x239   :  { %1224 = vsyncpa [#allocation9], 1 }
 0x23a   :  { %1226 = vsyncpa [#allocation9 + $0x1], 1 }

</bundles_post_ra>
